<compile_context>
chip_gen: v6e
topology: v6e:2x2x1
jax: 0.10.0
libtpu: 0.0.40
codegen_flags: <defaults>
</compile_context>

<pallas_src>
import jax
import jax.numpy as jnp
import numpy as np
from jax.experimental import pallas as pl
from jax.experimental.pallas import tpu as pltpu

LANE = 128
HPAD = 128          # hidden dim (64) padded to a full lane tile


# ----------------------------------------------------------------------------
# Fused Pallas kernel: 3 x (RGCNConv + ReLU + eval-BatchNorm1d) + Linear
# ----------------------------------------------------------------------------
def _hetero_rgcn_fused_kernel(adj_ref, x_ref,
                              w1_ref, p1_ref,
                              w2_ref, p2_ref,
                              w3_ref, p3_ref,
                              wl_ref, bl_ref,
                              o_ref, msg_ref):
    N = adj_ref.shape[0]
    H = msg_ref.shape[1]                  # padded hidden width (128)
    R1 = adj_ref.shape[1] // N            # num_relations + 1 (root folded in)
    adj = adj_ref[...]                    # bf16 [N, R1*N], loaded once, reused 3x

    def rgcn_relu_bn(h_bf, w_ref, p_ref):
        # ONE lane-stacked message matmul for all relations + the root transform
        msg_wide = jnp.dot(h_bf, w_ref[...],
                           preferred_element_type=jnp.float32)    # [N, R1*H] f32
        # regroup [N, R1*H] -> [R1*N, H]: 128-aligned lane slices stored
        # directly into the VMEM scratch slab (no concatenate copy)
        for r in range(R1):
            msg_ref[r * N:(r + 1) * N, :] = (
                msg_wide[:, r * H:(r + 1) * H].astype(jnp.bfloat16))
        # ONE aggregation matmul, K = (R+1)*N; identity block handles the root
        agg = jnp.dot(adj, msg_ref[...],
                      preferred_element_type=jnp.float32)          # [N, H] f32
        z = jnp.maximum(agg + p_ref[0], 0.0)                       # +bias, ReLU (f32)
        return (z * p_ref[1] + p_ref[2]).astype(jnp.bfloat16)      # eval BatchNorm1d

    h = rgcn_relu_bn(x_ref[...], w1_ref, p1_ref)
    h = rgcn_relu_bn(h, w2_ref, p2_ref)
    h = rgcn_relu_bn(h, w3_ref, p3_ref)
    # final Linear (Dropout is identity in eval mode); lane-dense padded output
    o_ref[...] = (jnp.dot(h, wl_ref[...], preferred_element_type=jnp.float32)
                  + bl_ref[...])


# ----------------------------------------------------------------------------
# Wrapper: weight packing + single pallas_call
# ----------------------------------------------------------------------------
def _pad_axis(a, axis, new_size):
    pad = [(0, 0)] * a.ndim
    pad[axis] = (0, new_size - a.shape[axis])
    return jnp.pad(a, pad)


def _pack_layer(layer_params, bn_params, f_in_pad):
    """Lane-stack (relations + root) weights along the output axis, pad H->HPAD."""
    w_rel, w_root, bias = layer_params        # [R,F,H], [F,H], [H]
    scale, shift = bn_params                  # [H], [H]
    R = w_rel.shape[0]
    slabs = ([_pad_axis(w_rel[r], 1, HPAD) for r in range(R)]
             + [_pad_axis(w_root, 1, HPAD)])
    w_stack = jnp.concatenate(slabs, axis=1)                    # [F, (R+1)*HPAD]
    w_stack = _pad_axis(w_stack, 0, f_in_pad).astype(jnp.bfloat16)
    p = jnp.stack([_pad_axis(bias, 0, HPAD),
                   _pad_axis(scale, 0, HPAD),
                   _pad_axis(shift, 0, HPAD)], axis=0).reshape(3, 1, HPAD)
    return w_stack, p.astype(jnp.float32)


def hetero_rgcn_forward(x, adj_full_bf16, params):
    """Runs the whole HeteroRGCN forward pass in a single pallas_call."""
    N, F = x.shape
    R = params["rgcn1"][0].shape[0]
    f1_pad = ((F + LANE - 1) // LANE) * LANE

    x_pad = _pad_axis(x, 1, f1_pad).astype(jnp.bfloat16)

    w1, p1 = _pack_layer(params["rgcn1"], params["bn1"], f1_pad)
    w2, p2 = _pack_layer(params["rgcn2"], params["bn2"], HPAD)
    w3, p3 = _pack_layer(params["rgcn3"], params["bn3"], HPAD)

    wl, bl = params["linear"]
    C = wl.shape[-1]
    c_pad = ((C + LANE - 1) // LANE) * LANE    # lane-dense output (>=128 lanes)
    wl_pad = _pad_axis(_pad_axis(wl, 0, HPAD), 1, c_pad).astype(jnp.bfloat16)
    bl_pad = _pad_axis(bl, 0, c_pad).reshape(1, c_pad).astype(jnp.float32)

    inputs = (adj_full_bf16, x_pad, w1, p1, w2, p2, w3, p3, wl_pad, bl_pad)

    out = pl.pallas_call(
        _hetero_rgcn_fused_kernel,
        out_shape=jax.ShapeDtypeStruct((N, c_pad), jnp.float32),
        in_specs=[pl.BlockSpec(memory_space=pltpu.MemorySpace.VMEM)] * len(inputs),
        out_specs=pl.BlockSpec(memory_space=pltpu.MemorySpace.VMEM),
        scratch_shapes=[pltpu.VMEM(((R + 1) * N, HPAD), jnp.bfloat16)],
        compiler_params=pltpu.CompilerParams(vmem_limit_bytes=32 * 1024 * 1024),
    )(*inputs)
    return out[:, :C]


hetero_rgcn_forward_jit = jax.jit(hetero_rgcn_forward)


# ----------------------------------------------------------------------------
# Glue: graph densification, parameters, pure-JAX reference
# ----------------------------------------------------------------------------
def build_relation_adjacency(edge_index, edge_type, num_nodes, num_relations):
    """A[r, i, j] = multiplicity(j->i, rel r) / in_degree_r(i) (mean aggregation)."""
    src, dst = edge_index[0], edge_index[1]
    adj = jnp.zeros((num_relations, num_nodes, num_nodes), jnp.float32)
    adj = adj.at[edge_type, dst, src].add(1.0)
    deg = adj.sum(axis=-1, keepdims=True)
    return jnp.where(deg > 0, adj / jnp.maximum(deg, 1.0), 0.0)


def hcat_adjacency_with_root(adj):
    """Kernel-layout adjacency: [N, (R+1)*N] bf16, dst-major relation slabs plus
    an identity block for the root transform.  Built ONCE and cached across
    forward calls (not re-transposed per call)."""
    R, N, _ = adj.shape
    adj_hcat = jnp.swapaxes(adj, 0, 1).reshape(N, R * N)
    adj_full = jnp.concatenate([adj_hcat, jnp.eye(N, dtype=jnp.float32)], axis=1)
    return adj_full.astype(jnp.bfloat16)


def bn_scale_shift(gamma, beta, mean, var, eps=1e-5):
    scale = gamma / jnp.sqrt(var + eps)
    shift = beta - mean * scale
    return scale, shift


def init_params(key, num_features, num_classes, num_relations, hidden=64):
    keys = jax.random.split(key, 16)

    def w(k, shape, scale=0.1):
        return scale * jax.random.normal(k, shape, dtype=jnp.float32)

    params = {}
    params["rgcn1"] = (w(keys[0], (num_relations, num_features, hidden)),
                       w(keys[1], (num_features, hidden)),
                       w(keys[2], (hidden,)))
    params["rgcn2"] = (w(keys[3], (num_relations, hidden, hidden)),
                       w(keys[4], (hidden, hidden)),
                       w(keys[5], (hidden,)))
    params["rgcn3"] = (w(keys[6], (num_relations, hidden, hidden)),
                       w(keys[7], (hidden, hidden)),
                       w(keys[8], (hidden,)))
    for i, kb in zip((1, 2, 3), (keys[9], keys[10], keys[11])):
        k1, k2, k3, k4 = jax.random.split(kb, 4)
        gamma = 1.0 + 0.1 * jax.random.normal(k1, (hidden,), jnp.float32)
        beta = 0.1 * jax.random.normal(k2, (hidden,), jnp.float32)
        mean = 0.1 * jax.random.normal(k3, (hidden,), jnp.float32)
        var = 1.0 + 0.1 * jax.random.uniform(k4, (hidden,), jnp.float32)
        params[f"bn{i}"] = bn_scale_shift(gamma, beta, mean, var)
    params["linear"] = (w(keys[12], (hidden, num_classes)),
                        w(keys[13], (num_classes,)))
    return params


def hetero_rgcn_forward_ref(x, adj, params):
    """Pure-JAX f32 reference for correctness checking."""
    def layer(h, lp, bn):
        w_rel, w_root, bias = lp
        agg = jnp.einsum("rij,rjf->if", adj,
                         jnp.einsum("jk,rkf->rjf", h, w_rel))
        out = agg + h @ w_root + bias
        out = jnp.maximum(out, 0.0)
        return out * bn[0] + bn[1]

    h = layer(x, params["rgcn1"], params["bn1"])
    h = layer(h, params["rgcn2"], params["bn2"])
    h = layer(h, params["rgcn3"], params["bn3"])
    return h @ params["linear"][0] + params["linear"][1]


# ----------------------------------------------------------------------------
if __name__ == "__main__":
    num_nodes = 64
    num_features = 16
    num_classes = 4
    num_relations = 3
    num_edges = 256

    key = jax.random.PRNGKey(0)
    kx, ke_src, ke_dst, ke_typ, kp = jax.random.split(key, 5)

    x = jax.random.normal(kx, (num_nodes, num_features), dtype=jnp.float32)
    edge_index = jnp.stack([
        jax.random.randint(ke_src, (num_edges,), 0, num_nodes),
        jax.random.randint(ke_dst, (num_edges,), 0, num_nodes),
    ])
    edge_type = jax.random.randint(ke_typ, (num_edges,), 0, num_relations)

    adj = build_relation_adjacency(edge_index, edge_type, num_nodes,
                                   num_relations)
    adj_full = hcat_adjacency_with_root(adj)       # built once, reused per call
    params = init_params(kp, num_features, num_classes, num_relations)

    out = hetero_rgcn_forward_jit(x, adj_full, params)
    out = jax.block_until_ready(out)

    ref = hetero_rgcn_forward_ref(x, adj, params)
    assert out.shape == (num_nodes, num_classes)
    # bf16 MXU operands (f32 accumulation) -> loosened tolerance per review
    np.testing.assert_allclose(np.asarray(out), np.asarray(ref),
                               rtol=2e-2, atol=2e-2)
    print("KERNEL_OK")
</pallas_src>

<mosaic_0001>
module attributes {stable_mosaic.version = 11 : i64} {
  func.func @_hetero_rgcn_fused_kernel(%arg0: memref<64x256xbf16, #tpu.memory_space<vmem>>, %arg1: memref<64x128xbf16, #tpu.memory_space<vmem>>, %arg2: memref<128x512xbf16, #tpu.memory_space<vmem>>, %arg3: memref<3x1x128xf32, #tpu.memory_space<vmem>>, %arg4: memref<128x512xbf16, #tpu.memory_space<vmem>>, %arg5: memref<3x1x128xf32, #tpu.memory_space<vmem>>, %arg6: memref<128x512xbf16, #tpu.memory_space<vmem>>, %arg7: memref<3x1x128xf32, #tpu.memory_space<vmem>>, %arg8: memref<128x128xbf16, #tpu.memory_space<vmem>>, %arg9: memref<1x128xf32, #tpu.memory_space<vmem>>, %arg10: memref<64x128xf32, #tpu.memory_space<vmem>>, %arg11: memref<256x128xbf16, #tpu.memory_space<vmem>>) attributes {dimension_semantics = [], scalar_prefetch = 0 : i64, scratch_operands = 1 : i64, tpu.core_type = #tpu.core_type<tc>} {
    %c0 = arith.constant 0 : index
    %c0_0 = arith.constant 0 : index
    %0 = vector.load %arg0[%c0, %c0_0] : memref<64x256xbf16, #tpu.memory_space<vmem>>, vector<64x256xbf16>
    %c0_1 = arith.constant 0 : index
    %c0_2 = arith.constant 0 : index
    %1 = vector.load %arg1[%c0_1, %c0_2] : memref<64x128xbf16, #tpu.memory_space<vmem>>, vector<64x128xbf16>
    %c0_3 = arith.constant 0 : index
    %c0_4 = arith.constant 0 : index
    %2 = vector.load %arg2[%c0_3, %c0_4] : memref<128x512xbf16, #tpu.memory_space<vmem>>, vector<128x512xbf16>
    %cst = arith.constant dense<0.000000e+00> : vector<64x512xf32>
    %3 = tpu.matmul %1, %2, %cst {dimension_numbers = #tpu.dot_dimension_numbers<[1], [0], [0], [1], [0, 0, 1, 1], [], []>} : vector<64x128xbf16>, vector<128x512xbf16>, vector<64x512xf32> -> vector<64x512xf32>
    %4 = vector.extract_strided_slice %3 {offsets = [0, 0], sizes = [64, 128], strides = [1, 1]} : vector<64x512xf32> to vector<64x128xf32>
    %5 = arith.truncf %4 : vector<64x128xf32> to vector<64x128xbf16>
    %c0_5 = arith.constant 0 : index
    %c0_6 = arith.constant 0 : index
    %6 = vector.load %arg11[%c0_5, %c0_6] : memref<256x128xbf16, #tpu.memory_space<vmem>>, vector<64x128xbf16>
    tpu.vector_store %arg11[%c0_5, %c0_6], %5 {strides = array<i32>} : memref<256x128xbf16, #tpu.memory_space<vmem>>, vector<64x128xbf16>,
    %7 = vector.extract_strided_slice %3 {offsets = [0, 128], sizes = [64, 128], strides = [1, 1]} : vector<64x512xf32> to vector<64x128xf32>
    %8 = arith.truncf %7 : vector<64x128xf32> to vector<64x128xbf16>
    %c64 = arith.constant 64 : index
    %c0_7 = arith.constant 0 : index
    %9 = vector.load %arg11[%c64, %c0_7] : memref<256x128xbf16, #tpu.memory_space<vmem>>, vector<64x128xbf16>
    tpu.vector_store %arg11[%c64, %c0_7], %8 {strides = array<i32>} : memref<256x128xbf16, #tpu.memory_space<vmem>>, vector<64x128xbf16>,
    %10 = vector.extract_strided_slice %3 {offsets = [0, 256], sizes = [64, 128], strides = [1, 1]} : vector<64x512xf32> to vector<64x128xf32>
    %11 = arith.truncf %10 : vector<64x128xf32> to vector<64x128xbf16>
    %c128 = arith.constant 128 : index
    %c0_8 = arith.constant 0 : index
    %12 = vector.load %arg11[%c128, %c0_8] : memref<256x128xbf16, #tpu.memory_space<vmem>>, vector<64x128xbf16>
    tpu.vector_store %arg11[%c128, %c0_8], %11 {strides = array<i32>} : memref<256x128xbf16, #tpu.memory_space<vmem>>, vector<64x128xbf16>,
    %13 = vector.extract_strided_slice %3 {offsets = [0, 384], sizes = [64, 128], strides = [1, 1]} : vector<64x512xf32> to vector<64x128xf32>
    %14 = arith.truncf %13 : vector<64x128xf32> to vector<64x128xbf16>
    %c192 = arith.constant 192 : index
    %c0_9 = arith.constant 0 : index
    %15 = vector.load %arg11[%c192, %c0_9] : memref<256x128xbf16, #tpu.memory_space<vmem>>, vector<64x128xbf16>
    tpu.vector_store %arg11[%c192, %c0_9], %14 {strides = array<i32>} : memref<256x128xbf16, #tpu.memory_space<vmem>>, vector<64x128xbf16>,
    %c0_10 = arith.constant 0 : index
    %c0_11 = arith.constant 0 : index
    %16 = vector.load %arg11[%c0_10, %c0_11] : memref<256x128xbf16, #tpu.memory_space<vmem>>, vector<256x128xbf16>
    %cst_12 = arith.constant dense<0.000000e+00> : vector<64x128xf32>
    %17 = tpu.matmul %0, %16, %cst_12 {dimension_numbers = #tpu.dot_dimension_numbers<[1], [0], [0], [1], [0, 0, 1, 1], [], []>} : vector<64x256xbf16>, vector<256x128xbf16>, vector<64x128xf32> -> vector<64x128xf32>
    %c0_13 = arith.constant 0 : index
    %c0_14 = arith.constant 0 : index
    %c0_15 = arith.constant 0 : index
    %18 = vector.load %arg3[%c0_13, %c0_14, %c0_15] : memref<3x1x128xf32, #tpu.memory_space<vmem>>, vector<1x1x128xf32>
    %19 = vector.shape_cast %18 : vector<1x1x128xf32> to vector<1x128xf32>
    %20 = vector.broadcast %19 : vector<1x128xf32> to vector<64x128xf32>
    %21 = arith.addf %17, %20 : vector<64x128xf32>
    %cst_16 = arith.constant 0.000000e+00 : f32
    %22 = vector.broadcast %cst_16 : f32 to vector<64x128xf32>
    %23 = arith.maximumf %21, %22 : vector<64x128xf32>
    %c1 = arith.constant 1 : index
    %c0_17 = arith.constant 0 : index
    %c0_18 = arith.constant 0 : index
    %24 = vector.load %arg3[%c1, %c0_17, %c0_18] : memref<3x1x128xf32, #tpu.memory_space<vmem>>, vector<1x1x128xf32>
    %25 = vector.shape_cast %24 : vector<1x1x128xf32> to vector<1x128xf32>
    %26 = vector.broadcast %25 : vector<1x128xf32> to vector<64x128xf32>
    %27 = arith.mulf %23, %26 : vector<64x128xf32>
    %c2 = arith.constant 2 : index
    %c0_19 = arith.constant 0 : index
    %c0_20 = arith.constant 0 : index
    %28 = vector.load %arg3[%c2, %c0_19, %c0_20] : memref<3x1x128xf32, #tpu.memory_space<vmem>>, vector<1x1x128xf32>
    %29 = vector.shape_cast %28 : vector<1x1x128xf32> to vector<1x128xf32>
    %30 = vector.broadcast %29 : vector<1x128xf32> to vector<64x128xf32>
    %31 = arith.addf %27, %30 : vector<64x128xf32>
    %32 = arith.truncf %31 : vector<64x128xf32> to vector<64x128xbf16>
    %c0_21 = arith.constant 0 : index
    %c0_22 = arith.constant 0 : index
    %33 = vector.load %arg4[%c0_21, %c0_22] : memref<128x512xbf16, #tpu.memory_space<vmem>>, vector<128x512xbf16>
    %cst_23 = arith.constant dense<0.000000e+00> : vector<64x512xf32>
    %34 = tpu.matmul %32, %33, %cst_23 {dimension_numbers = #tpu.dot_dimension_numbers<[1], [0], [0], [1], [0, 0, 1, 1], [], []>} : vector<64x128xbf16>, vector<128x512xbf16>, vector<64x512xf32> -> vector<64x512xf32>
    %35 = vector.extract_strided_slice %34 {offsets = [0, 0], sizes = [64, 128], strides = [1, 1]} : vector<64x512xf32> to vector<64x128xf32>
    %36 = arith.truncf %35 : vector<64x128xf32> to vector<64x128xbf16>
    %c0_24 = arith.constant 0 : index
    %c0_25 = arith.constant 0 : index
    %37 = vector.load %arg11[%c0_24, %c0_25] : memref<256x128xbf16, #tpu.memory_space<vmem>>, vector<64x128xbf16>
    tpu.vector_store %arg11[%c0_24, %c0_25], %36 {strides = array<i32>} : memref<256x128xbf16, #tpu.memory_space<vmem>>, vector<64x128xbf16>,
    %38 = vector.extract_strided_slice %34 {offsets = [0, 128], sizes = [64, 128], strides = [1, 1]} : vector<64x512xf32> to vector<64x128xf32>
    %39 = arith.truncf %38 : vector<64x128xf32> to vector<64x128xbf16>
    %c64_26 = arith.constant 64 : index
    %c0_27 = arith.constant 0 : index
    %40 = vector.load %arg11[%c64_26, %c0_27] : memref<256x128xbf16, #tpu.memory_space<vmem>>, vector<64x128xbf16>
    tpu.vector_store %arg11[%c64_26, %c0_27], %39 {strides = array<i32>} : memref<256x128xbf16, #tpu.memory_space<vmem>>, vector<64x128xbf16>,
    %41 = vector.extract_strided_slice %34 {offsets = [0, 256], sizes = [64, 128], strides = [1, 1]} : vector<64x512xf32> to vector<64x128xf32>
    %42 = arith.truncf %41 : vector<64x128xf32> to vector<64x128xbf16>
    %c128_28 = arith.constant 128 : index
    %c0_29 = arith.constant 0 : index
    %43 = vector.load %arg11[%c128_28, %c0_29] : memref<256x128xbf16, #tpu.memory_space<vmem>>, vector<64x128xbf16>
    tpu.vector_store %arg11[%c128_28, %c0_29], %42 {strides = array<i32>} : memref<256x128xbf16, #tpu.memory_space<vmem>>, vector<64x128xbf16>,
    %44 = vector.extract_strided_slice %34 {offsets = [0, 384], sizes = [64, 128], strides = [1, 1]} : vector<64x512xf32> to vector<64x128xf32>
    %45 = arith.truncf %44 : vector<64x128xf32> to vector<64x128xbf16>
    %c192_30 = arith.constant 192 : index
    %c0_31 = arith.constant 0 : index
    %46 = vector.load %arg11[%c192_30, %c0_31] : memref<256x128xbf16, #tpu.memory_space<vmem>>, vector<64x128xbf16>
    tpu.vector_store %arg11[%c192_30, %c0_31], %45 {strides = array<i32>} : memref<256x128xbf16, #tpu.memory_space<vmem>>, vector<64x128xbf16>,
    %c0_32 = arith.constant 0 : index
    %c0_33 = arith.constant 0 : index
    %47 = vector.load %arg11[%c0_32, %c0_33] : memref<256x128xbf16, #tpu.memory_space<vmem>>, vector<256x128xbf16>
    %cst_34 = arith.constant dense<0.000000e+00> : vector<64x128xf32>
    %48 = tpu.matmul %0, %47, %cst_34 {dimension_numbers = #tpu.dot_dimension_numbers<[1], [0], [0], [1], [0, 0, 1, 1], [], []>} : vector<64x256xbf16>, vector<256x128xbf16>, vector<64x128xf32> -> vector<64x128xf32>
    %c0_35 = arith.constant 0 : index
    %c0_36 = arith.constant 0 : index
    %c0_37 = arith.constant 0 : index
    %49 = vector.load %arg5[%c0_35, %c0_36, %c0_37] : memref<3x1x128xf32, #tpu.memory_space<vmem>>, vector<1x1x128xf32>
    %50 = vector.shape_cast %49 : vector<1x1x128xf32> to vector<1x128xf32>
    %51 = vector.broadcast %50 : vector<1x128xf32> to vector<64x128xf32>
    %52 = arith.addf %48, %51 : vector<64x128xf32>
    %cst_38 = arith.constant 0.000000e+00 : f32
    %53 = vector.broadcast %cst_38 : f32 to vector<64x128xf32>
    %54 = arith.maximumf %52, %53 : vector<64x128xf32>
    %c1_39 = arith.constant 1 : index
    %c0_40 = arith.constant 0 : index
    %c0_41 = arith.constant 0 : index
    %55 = vector.load %arg5[%c1_39, %c0_40, %c0_41] : memref<3x1x128xf32, #tpu.memory_space<vmem>>, vector<1x1x128xf32>
    %56 = vector.shape_cast %55 : vector<1x1x128xf32> to vector<1x128xf32>
    %57 = vector.broadcast %56 : vector<1x128xf32> to vector<64x128xf32>
    %58 = arith.mulf %54, %57 : vector<64x128xf32>
    %c2_42 = arith.constant 2 : index
    %c0_43 = arith.constant 0 : index
    %c0_44 = arith.constant 0 : index
    %59 = vector.load %arg5[%c2_42, %c0_43, %c0_44] : memref<3x1x128xf32, #tpu.memory_space<vmem>>, vector<1x1x128xf32>
    %60 = vector.shape_cast %59 : vector<1x1x128xf32> to vector<1x128xf32>
    %61 = vector.broadcast %60 : vector<1x128xf32> to vector<64x128xf32>
    %62 = arith.addf %58, %61 : vector<64x128xf32>
    %63 = arith.truncf %62 : vector<64x128xf32> to vector<64x128xbf16>
    %c0_45 = arith.constant 0 : index
    %c0_46 = arith.constant 0 : index
    %64 = vector.load %arg6[%c0_45, %c0_46] : memref<128x512xbf16, #tpu.memory_space<vmem>>, vector<128x512xbf16>
    %cst_47 = arith.constant dense<0.000000e+00> : vector<64x512xf32>
    %65 = tpu.matmul %63, %64, %cst_47 {dimension_numbers = #tpu.dot_dimension_numbers<[1], [0], [0], [1], [0, 0, 1, 1], [], []>} : vector<64x128xbf16>, vector<128x512xbf16>, vector<64x512xf32> -> vector<64x512xf32>
    %66 = vector.extract_strided_slice %65 {offsets = [0, 0], sizes = [64, 128], strides = [1, 1]} : vector<64x512xf32> to vector<64x128xf32>
    %67 = arith.truncf %66 : vector<64x128xf32> to vector<64x128xbf16>
    %c0_48 = arith.constant 0 : index
    %c0_49 = arith.constant 0 : index
    %68 = vector.load %arg11[%c0_48, %c0_49] : memref<256x128xbf16, #tpu.memory_space<vmem>>, vector<64x128xbf16>
    tpu.vector_store %arg11[%c0_48, %c0_49], %67 {strides = array<i32>} : memref<256x128xbf16, #tpu.memory_space<vmem>>, vector<64x128xbf16>,
    %69 = vector.extract_strided_slice %65 {offsets = [0, 128], sizes = [64, 128], strides = [1, 1]} : vector<64x512xf32> to vector<64x128xf32>
    %70 = arith.truncf %69 : vector<64x128xf32> to vector<64x128xbf16>
    %c64_50 = arith.constant 64 : index
    %c0_51 = arith.constant 0 : index
    %71 = vector.load %arg11[%c64_50, %c0_51] : memref<256x128xbf16, #tpu.memory_space<vmem>>, vector<64x128xbf16>
    tpu.vector_store %arg11[%c64_50, %c0_51], %70 {strides = array<i32>} : memref<256x128xbf16, #tpu.memory_space<vmem>>, vector<64x128xbf16>,
    %72 = vector.extract_strided_slice %65 {offsets = [0, 256], sizes = [64, 128], strides = [1, 1]} : vector<64x512xf32> to vector<64x128xf32>
    %73 = arith.truncf %72 : vector<64x128xf32> to vector<64x128xbf16>
    %c128_52 = arith.constant 128 : index
    %c0_53 = arith.constant 0 : index
    %74 = vector.load %arg11[%c128_52, %c0_53] : memref<256x128xbf16, #tpu.memory_space<vmem>>, vector<64x128xbf16>
    tpu.vector_store %arg11[%c128_52, %c0_53], %73 {strides = array<i32>} : memref<256x128xbf16, #tpu.memory_space<vmem>>, vector<64x128xbf16>,
    %75 = vector.extract_strided_slice %65 {offsets = [0, 384], sizes = [64, 128], strides = [1, 1]} : vector<64x512xf32> to vector<64x128xf32>
    %76 = arith.truncf %75 : vector<64x128xf32> to vector<64x128xbf16>
    %c192_54 = arith.constant 192 : index
    %c0_55 = arith.constant 0 : index
    %77 = vector.load %arg11[%c192_54, %c0_55] : memref<256x128xbf16, #tpu.memory_space<vmem>>, vector<64x128xbf16>
    tpu.vector_store %arg11[%c192_54, %c0_55], %76 {strides = array<i32>} : memref<256x128xbf16, #tpu.memory_space<vmem>>, vector<64x128xbf16>,
    %c0_56 = arith.constant 0 : index
    %c0_57 = arith.constant 0 : index
    %78 = vector.load %arg11[%c0_56, %c0_57] : memref<256x128xbf16, #tpu.memory_space<vmem>>, vector<256x128xbf16>
    %cst_58 = arith.constant dense<0.000000e+00> : vector<64x128xf32>
    %79 = tpu.matmul %0, %78, %cst_58 {dimension_numbers = #tpu.dot_dimension_numbers<[1], [0], [0], [1], [0, 0, 1, 1], [], []>} : vector<64x256xbf16>, vector<256x128xbf16>, vector<64x128xf32> -> vector<64x128xf32>
    %c0_59 = arith.constant 0 : index
    %c0_60 = arith.constant 0 : index
    %c0_61 = arith.constant 0 : index
    %80 = vector.load %arg7[%c0_59, %c0_60, %c0_61] : memref<3x1x128xf32, #tpu.memory_space<vmem>>, vector<1x1x128xf32>
    %81 = vector.shape_cast %80 : vector<1x1x128xf32> to vector<1x128xf32>
    %82 = vector.broadcast %81 : vector<1x128xf32> to vector<64x128xf32>
    %83 = arith.addf %79, %82 : vector<64x128xf32>
    %cst_62 = arith.constant 0.000000e+00 : f32
    %84 = vector.broadcast %cst_62 : f32 to vector<64x128xf32>
    %85 = arith.maximumf %83, %84 : vector<64x128xf32>
    %c1_63 = arith.constant 1 : index
    %c0_64 = arith.constant 0 : index
    %c0_65 = arith.constant 0 : index
    %86 = vector.load %arg7[%c1_63, %c0_64, %c0_65] : memref<3x1x128xf32, #tpu.memory_space<vmem>>, vector<1x1x128xf32>
    %87 = vector.shape_cast %86 : vector<1x1x128xf32> to vector<1x128xf32>
    %88 = vector.broadcast %87 : vector<1x128xf32> to vector<64x128xf32>
    %89 = arith.mulf %85, %88 : vector<64x128xf32>
    %c2_66 = arith.constant 2 : index
    %c0_67 = arith.constant 0 : index
    %c0_68 = arith.constant 0 : index
    %90 = vector.load %arg7[%c2_66, %c0_67, %c0_68] : memref<3x1x128xf32, #tpu.memory_space<vmem>>, vector<1x1x128xf32>
    %91 = vector.shape_cast %90 : vector<1x1x128xf32> to vector<1x128xf32>
    %92 = vector.broadcast %91 : vector<1x128xf32> to vector<64x128xf32>
    %93 = arith.addf %89, %92 : vector<64x128xf32>
    %94 = arith.truncf %93 : vector<64x128xf32> to vector<64x128xbf16>
    %c0_69 = arith.constant 0 : index
    %c0_70 = arith.constant 0 : index
    %95 = vector.load %arg8[%c0_69, %c0_70] : memref<128x128xbf16, #tpu.memory_space<vmem>>, vector<128x128xbf16>
    %cst_71 = arith.constant dense<0.000000e+00> : vector<64x128xf32>
    %96 = tpu.matmul %94, %95, %cst_71 {dimension_numbers = #tpu.dot_dimension_numbers<[1], [0], [0], [1], [0, 0, 1, 1], [], []>} : vector<64x128xbf16>, vector<128x128xbf16>, vector<64x128xf32> -> vector<64x128xf32>
    %c0_72 = arith.constant 0 : index
    %c0_73 = arith.constant 0 : index
    %97 = vector.load %arg9[%c0_72, %c0_73] : memref<1x128xf32, #tpu.memory_space<vmem>>, vector<1x128xf32>
    %98 = vector.broadcast %97 : vector<1x128xf32> to vector<64x128xf32>
    %99 = arith.addf %96, %98 : vector<64x128xf32>
    %c0_74 = arith.constant 0 : index
    %c0_75 = arith.constant 0 : index
    %100 = vector.load %arg10[%c0_74, %c0_75] : memref<64x128xf32, #tpu.memory_space<vmem>>, vector<64x128xf32>
    tpu.vector_store %arg10[%c0_74, %c0_75], %99 {strides = array<i32>} : memref<64x128xf32, #tpu.memory_space<vmem>>, vector<64x128xf32>,
    return
  }
}

</mosaic_0001>

<bundles_post_ra>
// kernel: hetero_rgcn_forward.1
= control target key start
LH: loop header
LB: loop body
LE: loop exit
PB: predicated region body
PF: predicated region fallthrough
CT: control target
= control target key end

     0   :  { %v3528_v1 = vmov 0   ;;  %s4066_s2 = inlined_call_operand.vmem [shape: bf16[128,512], index: 2, kind: input, shape index: {}]   ;;  %s4067_s1 = inlined_call_operand.vmem [shape: bf16[64,128], index: 1, kind: input, shape index: {}]   ;;  %s4068_s0 = inlined_call_operand.vmem [shape: bf16[64,256], index: 0, kind: input, shape index: {}]   ;;  %s4069_s4 = inlined_call_operand.vmem [shape: bf16[128,512], index: 4, kind: input, shape index: {}]   ;;  %s4070_s3 = inlined_call_operand.vmem [shape: f32[3,1,128], index: 3, kind: input, shape index: {}]   ;;  %s4071_s6 = inlined_call_operand.vmem [shape: bf16[128,512], index: 6, kind: input, shape index: {}]   ;;  %s4072_s5 = inlined_call_operand.vmem [shape: f32[3,1,128], index: 5, kind: input, shape index: {}]   ;;  %s4073_s8 = inlined_call_operand.vmem [shape: bf16[128,128], index: 8, kind: input, shape index: {}]   ;;  %s4074_s7 = inlined_call_operand.vmem [shape: f32[3,1,128], index: 7, kind: input, shape index: {}]   ;;  %s4075_s9 = inlined_call_operand.vmem [shape: f32[1,128], index: 9, kind: input, shape index: {}]   ;;  %s4076_s10 = inlined_call_operand.vmem [shape: f32[64,128], index: 10, kind: output, shape index: {}]  }
   0x1   :  { %v3304_v0 = vld [vmem:[%s4066_s2 + $0xe4] ss:$16 sps:$4 sm:$0xff]   ;;  %300 = vmatprep.mubr.bf16.mxu0 %v3528_v1  ;;  %373 = vmatprep.mubr.bf16.mxu1 %v3528_v1  ;;  %v3306_v2 = vld [vmem:[%s4066_s2 + $0xec] ss:$16 sps:$4 sm:$0xff]   ;;  %v3308_v3 = vld [vmem:[%s4066_s2 + $0xe0] ss:$16 sps:$4 sm:$0xff]  }
   0x2   :  { %268 = vmatprep.subr.bf16.mxu0 %v3304_v0  ;;  %v3309_v4 = vld [vmem:[%s4066_s2 + $0xe8] ss:$16 sps:$4 sm:$0xff]   ;;  %341 = vmatprep.subr.bf16.mxu1 %v3306_v2  ;;  %v3310_v5 = vld [vmem:[%s4066_s2 + $0xc4] ss:$16 sps:$4 sm:$0xff]   ;;  %v3312_v6 = vld [vmem:[%s4066_s2 + $0xcc] ss:$16 sps:$4 sm:$0xff]  }
   0x3   :  { %269 = vmatpush1.bf16.msra.mxu0 %v3308_v3  ;;  %342 = vmatpush1.bf16.msra.mxu1 %v3309_v4  ;;  %v3314_v7 = vld [vmem:[%s4066_s2 + $0xc0] ss:$16 sps:$4 sm:$0xff]   ;;  %v3315_v8 = vld [vmem:[%s4066_s2 + $0xc8] ss:$16 sps:$4 sm:$0xff]   ;;  %v3316_v9 = vld [vmem:[%s4066_s2 + $0xa4] ss:$16 sps:$4 sm:$0xff]  }
   0x4   :  { %270 = vmatprep.subr.bf16.mxu0 %v3310_v5  ;;  %343 = vmatprep.subr.bf16.mxu1 %v3312_v6  ;;  %v3318_v10 = vld [vmem:[%s4066_s2 + $0xac] ss:$16 sps:$4 sm:$0xff]   ;;  %v3320_v11 = vld [vmem:[%s4066_s2 + $0xa0] ss:$16 sps:$4 sm:$0xff]   ;;  %v3321_v12 = vld [vmem:[%s4066_s2 + $0xa8] ss:$16 sps:$4 sm:$0xff]  }
   0x5   :  { %v3322_v13 = vld [vmem:[%s4066_s2 + $0x84] ss:$16 sps:$4 sm:$0xff]   ;;  %v3324_v14 = vld [vmem:[%s4066_s2 + $0x8c] ss:$16 sps:$4 sm:$0xff]   ;;  %v3326_v15 = vld [vmem:[%s4066_s2 + $0x80] ss:$16 sps:$4 sm:$0xff]  }
   0x6   :  { %v3327_v16 = vld [vmem:[%s4066_s2 + $0x88] ss:$16 sps:$4 sm:$0xff]   ;;  %v3328_v17 = vld [vmem:[%s4066_s2 + $0x64] ss:$16 sps:$4 sm:$0xff]   ;;  %v3330_v18 = vld [vmem:[%s4066_s2 + $0x6c] ss:$16 sps:$4 sm:$0xff]  }
   0x7   :  { %271 = vmatpush1.bf16.msra.mxu0 %v3314_v7  ;;  %344 = vmatpush1.bf16.msra.mxu1 %v3315_v8  ;;  %v3332_v19 = vld [vmem:[%s4066_s2 + $0x60] ss:$16 sps:$4 sm:$0xff]   ;;  %v3333_v20 = vld [vmem:[%s4066_s2 + $0x68] ss:$16 sps:$4 sm:$0xff]   ;;  %v3334_v21 = vld [vmem:[%s4066_s2 + $0x44] ss:$16 sps:$4 sm:$0xff]  }
   0x8   :  { %272 = vmatprep.subr.bf16.mxu0 %v3316_v9  ;;  %345 = vmatprep.subr.bf16.mxu1 %v3318_v10  ;;  %v3336_v22 = vld [vmem:[%s4066_s2 + $0x4c] ss:$16 sps:$4 sm:$0xff]   ;;  %v3338_v23 = vld [vmem:[%s4066_s2 + $0x40] ss:$16 sps:$4 sm:$0xff]   ;;  %v3339_v24 = vld [vmem:[%s4066_s2 + $0x48] ss:$16 sps:$4 sm:$0xff]  }
   0x9   :  { %v3340_v25 = vld [vmem:[%s4066_s2 + $0x24] ss:$16 sps:$4 sm:$0xff]   ;;  %v3342_v26 = vld [vmem:[%s4066_s2 + $0x2c] ss:$16 sps:$4 sm:$0xff]   ;;  %v3344_v27 = vld [vmem:[%s4066_s2 + $0x20] ss:$16 sps:$4 sm:$0xff]  }
   0xa   :  { %v3345_v28 = vld [vmem:[%s4066_s2 + $0x28] ss:$16 sps:$4 sm:$0xff]   ;;  %v3346_v29 = vld [vmem:[%s4066_s2 + $0x4] ss:$16 sps:$4 sm:$0xff]   ;;  %v3348_v30 = vld [vmem:[%s4066_s2 + $0xc] ss:$16 sps:$4 sm:$0xff]  }
   0xb   :  { %273 = vmatpush1.bf16.msra.mxu0 %v3320_v11  ;;  %346 = vmatpush1.bf16.msra.mxu1 %v3321_v12  ;;  %v3350_v31 = vld [vmem:[%s4066_s2] ss:$16 sps:$4 sm:$0xff]   ;;  %v3351_v32 = vld [vmem:[%s4066_s2 + $0x8] ss:$16 sps:$4 sm:$0xff]   ;;  %v3704_v37 = vld [vmem:[%s4068_s0 + $0x4] ss:$8 sps:$4 sm:$0xff]  }
   0xc   :  { %274 = vmatprep.subr.bf16.mxu0 %v3322_v13  ;;  %347 = vmatprep.subr.bf16.mxu1 %v3324_v14  ;;  %v3352_v33 = vld [vmem:[%s4067_s1] sm:$0xff]   ;;  %v3353_v34 = vld [vmem:[%s4067_s1 + $0x8] sm:$0xff]   ;;  %v3354_v35 = vld [vmem:[%s4067_s1 + $0x10] sm:$0xff]  }
   0xd   :  { %v3355_v36 = vld [vmem:[%s4067_s1 + $0x18] sm:$0xff]   ;;  %v3384_v38 = vld [vmem:[%s4069_s4 + $0xe0] ss:$16 sps:$4 sm:$0xff]   ;;  %v3386_v39 = vld [vmem:[%s4069_s4 + $0xe4] ss:$16 sps:$4 sm:$0xff]  }
   0xe   :  { %v3392_v40 = vld [vmem:[%s4069_s4 + $0xc4] ss:$16 sps:$4 sm:$0xff]   ;;  %v3390_v41 = vld [vmem:[%s4069_s4 + $0xc0] ss:$16 sps:$4 sm:$0xff]  }
   0xf   :  { %275 = vmatpush1.bf16.msra.mxu0 %v3326_v15  ;;  %348 = vmatpush1.bf16.msra.mxu1 %v3327_v16  ;;  %v3398_v42 = vld [vmem:[%s4069_s4 + $0xa4] ss:$16 sps:$4 sm:$0xff]   ;;  %v3396_v43 = vld [vmem:[%s4069_s4 + $0xa0] ss:$16 sps:$4 sm:$0xff]  }
  0x10   :  { %276 = vmatprep.subr.bf16.mxu0 %v3328_v17  ;;  %349 = vmatprep.subr.bf16.mxu1 %v3330_v18  ;;  %v3404_v44 = vld [vmem:[%s4069_s4 + $0x84] ss:$16 sps:$4 sm:$0xff]   ;;  %v3402_v45 = vld [vmem:[%s4069_s4 + $0x80] ss:$16 sps:$4 sm:$0xff]  }
  0x13   :  { %277 = vmatpush1.bf16.msra.mxu0 %v3332_v19  ;;  %350 = vmatpush1.bf16.msra.mxu1 %v3333_v20 }
  0x14   :  { %278 = vmatprep.subr.bf16.mxu0 %v3334_v21  ;;  %351 = vmatprep.subr.bf16.mxu1 %v3336_v22 }
  0x17   :  { %279 = vmatpush1.bf16.msra.mxu0 %v3338_v23  ;;  %352 = vmatpush1.bf16.msra.mxu1 %v3339_v24 }
  0x18   :  { %280 = vmatprep.subr.bf16.mxu0 %v3340_v25  ;;  %353 = vmatprep.subr.bf16.mxu1 %v3342_v26 }
  0x1b   :  { %281 = vmatpush1.bf16.msra.mxu0 %v3344_v27  ;;  %354 = vmatpush1.bf16.msra.mxu1 %v3345_v28 }
  0x1c   :  { %282 = vmatprep.subr.bf16.mxu0 %v3346_v29  ;;  %355 = vmatprep.subr.bf16.mxu1 %v3348_v30 }
  0x1f   :  { %283 = vmatpush1.bf16.msra.mxu0 %v3350_v31  ;;  %356 = vmatpush1.bf16.msra.mxu1 %v3351_v32 }
  0x20   :  { %1050 = vmatprep.subr.bf16.mxu1 %v3386_v39 }
  0x22   :  { %301 = vmatmul.mubr.bf16.vlgmr.msra.gmra.mxu0 %v3352_v33  ;;  %374 = vmatmul.mubr.bf16.vlgmr.msra.gmra.mxu1 %v3352_v33 }
  0x23   :  { %310 = vmatprep.mubr.bf16.mxu0 %v3528_v1  ;;  %383 = vmatprep.mubr.bf16.mxu1 %v3528_v1 }
  0x24   :  { %1051 = vmatpush1.bf16.msra.mxu1 %v3384_v38 }
  0x25   :  { %1052 = vmatprep.subr.bf16.mxu1 %v3392_v40 }
  0x28   :  { %1053 = vmatpush1.bf16.msra.mxu1 %v3390_v41 }
  0x29   :  { %1054 = vmatprep.subr.bf16.mxu1 %v3398_v42 }
  0x2a   :  { %311 = vmatmul.mubr.bf16.gmra.mxu0 %v3353_v34  ;;  %384 = vmatmul.mubr.bf16.gmra.mxu1 %v3353_v34 }
  0x2b   :  { %320 = vmatprep.mubr.bf16.mxu0 %v3528_v1  ;;  %393 = vmatprep.mubr.bf16.mxu1 %v3528_v1 }
  0x2c   :  { %1055 = vmatpush1.bf16.msra.mxu1 %v3396_v43 }
  0x2d   :  { %1056 = vmatprep.subr.bf16.mxu1 %v3404_v44 }
  0x30   :  { %1057 = vmatpush1.bf16.msra.mxu1 %v3402_v45 }
  0x32   :  { %321 = vmatmul.mubr.bf16.gmra.mxu0 %v3354_v35  ;;  %394 = vmatmul.mubr.bf16.gmra.mxu1 %v3354_v35 }
  0x33   :  { %330 = vmatprep.mubr.bf16.mxu0 %v3528_v1  ;;  %403 = vmatprep.mubr.bf16.mxu1 %v3528_v1 }
  0x3a   :  { %331 = vmatmul.mubr.bf16.gmra.mxu0 %v3355_v36  ;;  %404 = vmatmul.mubr.bf16.gmra.mxu1 %v3355_v36 }
  0x3b   :  { %1082 = vmatprep.mubr.bf16.mxu1 %v3528_v1  ;;  %781 = vmatprep.mubr.bf16.mxu0 %v3704_v37 }
  0xe2   :  { %v302_v46 = vpop.f32.mrf.mxu0  ;;  %v375_v47 = vpop.f32.mrf.mxu1 }
  0xe4   :  { %v304_v48 = vpop.f32.mrf.mxu0  ;;  %v377_v49 = vpop.f32.mrf.mxu1 }
  0xe6   :  { %v306_v50 = vpop.f32.mrf.mxu0  ;;  %v379_v51 = vpop.f32.mrf.mxu1 }
  0xe7   :  { %v2865_v52 = vpack.c.bf16 %v306_v50, %v302_v46  ;;  %v2905_v53 = vpack.c.bf16 %v379_v51, %v375_v47  ;;  %v3389_v47 = vld [vmem:[%s4069_s4 + $0xec] ss:$16 sps:$4 sm:$0xff]   ;;  %v3387_v51 = vld [vmem:[%s4069_s4 + $0xe8] ss:$16 sps:$4 sm:$0xff]  }
  0xe8   :  { %v308_v54 = vpop.f32.mrf.mxu0  ;;  %v381_v55 = vpop.f32.mrf.mxu1  ;;  %v3742_v50 = vld [vmem:[%s4068_s0 + $0x14] ss:$8 sps:$4 sm:$0xff]  }
  0xe9   :  { %2866 = vst [vmem:[#allocation2] sm:$0xff] %v2865_v52   ;;  %3109 = vst [vmem:[#allocation2 + $0x40] sm:$0xff] %v2905_v53   ;;  %v2885_v56 = vpack.c.bf16 %v308_v54, %v304_v48  ;;  %v2925_v57 = vpack.c.bf16 %v381_v55, %v377_v49  ;;  %v3737_v49 = vld [vmem:[%s4068_s0] ss:$8 sps:$4 sm:$0xff]   ;;  %v3395_v52 = vld [vmem:[%s4069_s4 + $0xcc] ss:$16 sps:$4 sm:$0xff]  }
  0xea   :  { %v312_v58 = vpop.f32.mrf.mxu0  ;;  %v385_v59 = vpop.f32.mrf.mxu1  ;;  %v3393_v53 = vld [vmem:[%s4069_s4 + $0xc8] ss:$16 sps:$4 sm:$0xff]   ;;  %v3401_v54 = vld [vmem:[%s4069_s4 + $0xac] ss:$16 sps:$4 sm:$0xff]  }
  0xeb   :  { %3105 = vst [vmem:[#allocation2 + $0x20] sm:$0xff] %v2885_v56   ;;  %3113 = vst [vmem:[#allocation2 + $0x60] sm:$0xff] %v2925_v57   ;;  %v3761_v55 = vld [vmem:[%s4068_s0 + $0x10] ss:$8 sps:$4 sm:$0xff]   ;;  %v3766_v56 = vld [vmem:[%s4068_s0 + $0x24] ss:$8 sps:$4 sm:$0xff]  }
  0xec   :  { %v314_v60 = vpop.f32.mrf.mxu0  ;;  %v387_v61 = vpop.f32.mrf.mxu1  ;;  %v3399_v57 = vld [vmem:[%s4069_s4 + $0xa8] ss:$16 sps:$4 sm:$0xff]  }
  0xee   :  { %v316_v62 = vpop.f32.mrf.mxu0  ;;  %v389_v63 = vpop.f32.mrf.mxu1 }
  0xef   :  { %v2870_v0 = vpack.c.bf16 %v316_v62, %v312_v58  ;;  %v2910_v2 = vpack.c.bf16 %v389_v63, %v385_v59  ;;  %v3407_v58 = vld [vmem:[%s4069_s4 + $0x8c] ss:$16 sps:$4 sm:$0xff]   ;;  %v3405_v59 = vld [vmem:[%s4069_s4 + $0x88] ss:$16 sps:$4 sm:$0xff]   ;;  %v3410_v63 = vld [vmem:[%s4069_s4 + $0x64] ss:$16 sps:$4 sm:$0xff]  }
  0xf0   :  { %v318_v3 = vpop.f32.mrf.mxu0  ;;  %v391_v4 = vpop.f32.mrf.mxu1  ;;  %v3370_v46 = vld [vmem:[#allocation2 + $0x40] sm:$0xff]   ;;  %v3794_v62 = vld [vmem:[%s4068_s0 + $0x30] ss:$8 sps:$4 sm:$0xff]   ;;  %1058 = vmatprep.subr.bf16.mxu1 %v3410_v63 }
  0xf1   :  { %3102 = vst [vmem:[#allocation2 + $0x8] sm:$0xff] %v2870_v0   ;;  %3110 = vst [vmem:[#allocation2 + $0x48] sm:$0xff] %v2910_v2   ;;  %v2890_v5 = vpack.c.bf16 %v318_v3, %v314_v60  ;;  %v2930_v6 = vpack.c.bf16 %v391_v4, %v387_v61  ;;  %v3371_v48 = vld [vmem:[#allocation2] sm:$0xff]   ;;  %v3787_v61 = vld [vmem:[%s4068_s0 + $0x34] ss:$8 sps:$4 sm:$0xff]  }
  0xf2   :  { %v322_v7 = vpop.f32.mrf.mxu0  ;;  %v395_v8 = vpop.f32.mrf.mxu1  ;;  %v3362_v38 = vld [vmem:[#allocation2 + $0x60] sm:$0xff]   ;;  %v3413_v0 = vld [vmem:[%s4069_s4 + $0x6c] ss:$16 sps:$4 sm:$0xff]   ;;  %v3411_v3 = vld [vmem:[%s4069_s4 + $0x68] ss:$16 sps:$4 sm:$0xff]  }
  0xf3   :  { %3106 = vst [vmem:[#allocation2 + $0x28] sm:$0xff] %v2890_v5   ;;  %3114 = vst [vmem:[#allocation2 + $0x68] sm:$0xff] %v2930_v6   ;;  %v3363_v39 = vld [vmem:[#allocation2 + $0x20] sm:$0xff]   ;;  %v3419_v5 = vld [vmem:[%s4069_s4 + $0x4c] ss:$16 sps:$4 sm:$0xff]  }
  0xf4   :  { %v324_v9 = vpop.f32.mrf.mxu0  ;;  %v397_v10 = vpop.f32.mrf.mxu1  ;;  %v3782_v60 = vld [vmem:[%s4068_s0 + $0x20] ss:$8 sps:$4 sm:$0xff]   ;;  %v3416_v4 = vld [vmem:[%s4069_s4 + $0x44] ss:$16 sps:$4 sm:$0xff]  }
  0xf5   :  { %v3408_v2 = vld [vmem:[%s4069_s4 + $0x60] ss:$16 sps:$4 sm:$0xff]  }
  0xf6   :  { %v326_v11 = vpop.f32.mrf.mxu0  ;;  %v399_v12 = vpop.f32.mrf.mxu1  ;;  %1059 = vmatpush1.bf16.msra.mxu1 %v3408_v2  ;;  %v3414_v6 = vld [vmem:[%s4069_s4 + $0x40] ss:$16 sps:$4 sm:$0xff]  }
  0xf7   :  { %v2875_v13 = vpack.c.bf16 %v326_v11, %v322_v7  ;;  %v2915_v14 = vpack.c.bf16 %v399_v12, %v395_v8  ;;  %v3417_v7 = vld [vmem:[%s4069_s4 + $0x48] ss:$16 sps:$4 sm:$0xff]   ;;  %1060 = vmatprep.subr.bf16.mxu1 %v3416_v4  ;;  %v3422_v8 = vld [vmem:[%s4069_s4 + $0x24] ss:$16 sps:$4 sm:$0xff]  }
  0xf8   :  { %v328_v15 = vpop.f32.mrf.mxu0  ;;  %v401_v16 = vpop.f32.mrf.mxu1  ;;  %v3368_v44 = vld [vmem:[#allocation2 + $0x48] sm:$0xff]   ;;  %v3428_v12 = vld [vmem:[%s4069_s4 + $0x4] ss:$16 sps:$4 sm:$0xff]  }
  0xf9   :  { %3103 = vst [vmem:[#allocation2 + $0x10] sm:$0xff] %v2875_v13   ;;  %3111 = vst [vmem:[#allocation2 + $0x50] sm:$0xff] %v2915_v14   ;;  %v2895_v17 = vpack.c.bf16 %v328_v15, %v324_v9  ;;  %v2935_v18 = vpack.c.bf16 %v401_v16, %v397_v10  ;;  %v3369_v45 = vld [vmem:[#allocation2 + $0x8] sm:$0xff]   ;;  %v3420_v10 = vld [vmem:[%s4069_s4 + $0x20] ss:$16 sps:$4 sm:$0xff]  }
  0xfa   :  { %v332_v19 = vpop.f32.mrf.mxu0  ;;  %v405_v20 = vpop.f32.mrf.mxu1  ;;  %v3360_v35 = vld [vmem:[#allocation2 + $0x68] sm:$0xff]   ;;  %1061 = vmatpush1.bf16.msra.mxu1 %v3414_v6  ;;  %v3426_v14 = vld [vmem:[%s4069_s4] ss:$16 sps:$4 sm:$0xff]  }
  0xfb   :  { %3107 = vst [vmem:[#allocation2 + $0x30] sm:$0xff] %v2895_v17   ;;  %3115 = vst [vmem:[#allocation2 + $0x70] sm:$0xff] %v2935_v18   ;;  %v3361_v36 = vld [vmem:[#allocation2 + $0x28] sm:$0xff]   ;;  %1062 = vmatprep.subr.bf16.mxu1 %v3422_v8  ;;  %v2558_v17 = vld [vmem:[%s4070_s3] ss:$0 sm:$0xff] }
  0xfc   :  { %v334_v21 = vpop.f32.mrf.mxu0  ;;  %v407_v22 = vpop.f32.mrf.mxu1  ;;  %v3425_v9 = vld [vmem:[%s4069_s4 + $0x2c] ss:$16 sps:$4 sm:$0xff]   ;;  %v3423_v11 = vld [vmem:[%s4069_s4 + $0x28] ss:$16 sps:$4 sm:$0xff]  }
  0xfd   :  { %v3431_v13 = vld [vmem:[%s4069_s4 + $0xc] ss:$16 sps:$4 sm:$0xff]   ;;  %v3429_v15 = vld [vmem:[%s4069_s4 + $0x8] ss:$16 sps:$4 sm:$0xff]  }
  0xfe   :  { %v336_v23 = vpop.f32.mrf.mxu0  ;;  %v409_v24 = vpop.f32.mrf.mxu1  ;;  %1063 = vmatpush1.bf16.msra.mxu1 %v3420_v10 }
  0xff   :  { %v2880_v25 = vpack.c.bf16 %v336_v23, %v332_v19  ;;  %v2920_v26 = vpack.c.bf16 %v409_v24, %v405_v20  ;;  %1064 = vmatprep.subr.bf16.mxu1 %v3428_v12 }
 0x100   :  { %v338_v27 = vpop.f32.mrf.mxu0  ;;  %v411_v28 = vpop.f32.mrf.mxu1  ;;  %v3366_v42 = vld [vmem:[#allocation2 + $0x50] sm:$0xff]  }
 0x101   :  { %3104 = vst [vmem:[#allocation2 + $0x18] sm:$0xff] %v2880_v25   ;;  %3112 = vst [vmem:[#allocation2 + $0x58] sm:$0xff] %v2920_v26   ;;  %v2900_v29 = vpack.c.bf16 %v338_v27, %v334_v21  ;;  %v2940_v30 = vpack.c.bf16 %v411_v28, %v407_v22  ;;  %v3367_v43 = vld [vmem:[#allocation2 + $0x10] sm:$0xff]   ;;  %v2584_v25 = vld [vmem:[%s4070_s3 + $0x1] ss:$0 sm:$0xff] }
 0x102   :  { %v3358_v33 = vld [vmem:[#allocation2 + $0x70] sm:$0xff]   ;;  %1065 = vmatpush1.bf16.msra.mxu1 %v3426_v14 }
 0x103   :  { %3108 = vst [vmem:[#allocation2 + $0x38] sm:$0xff] %v2900_v29   ;;  %3116 = vst [vmem:[#allocation2 + $0x78] sm:$0xff] %v2940_v30   ;;  %v3359_v34 = vld [vmem:[#allocation2 + $0x30] sm:$0xff]  }
 0x108   :  { %v3364_v40 = vld [vmem:[#allocation2 + $0x58] sm:$0xff]  }
 0x109   :  { %v3365_v41 = vld [vmem:[#allocation2 + $0x18] sm:$0xff]  }
 0x10a   :  { %v3356_v31 = vld [vmem:[#allocation2 + $0x78] sm:$0xff]  }
 0x10b   :  { %v3357_v32 = vld [vmem:[#allocation2 + $0x38] sm:$0xff]   ;;  %3147 = vmatprep.subr.bf16.mxu0 %v3356_v31 }
 0x10c   :  { %3148 = vmatpush3.bf16.msra.mxu0 %v3357_v32  ;;  %v2586_v32 = vld [vmem:[%s4070_s3 + $0x2] ss:$0 sm:$0xff] }
 0x10d   :  { %3149 = vmatprep.subr.bf16.mxu0 %v3358_v33 }
 0x110   :  { %3150 = vmatpush3.bf16.msra.mxu0 %v3359_v34 }
 0x111   :  { %3151 = vmatprep.subr.bf16.mxu0 %v3360_v35 }
 0x114   :  { %3152 = vmatpush3.bf16.msra.mxu0 %v3361_v36 }
 0x115   :  { %3153 = vmatprep.subr.bf16.mxu0 %v3362_v38 }
 0x118   :  { %3154 = vmatpush3.bf16.msra.mxu0 %v3363_v39 }
 0x119   :  { %3155 = vmatprep.subr.bf16.mxu0 %v3364_v40 }
 0x11c   :  { %3156 = vmatpush3.bf16.msra.mxu0 %v3365_v41 }
 0x11d   :  { %3157 = vmatprep.subr.bf16.mxu0 %v3366_v42 }
 0x120   :  { %3158 = vmatpush3.bf16.msra.mxu0 %v3367_v43 }
 0x121   :  { %3159 = vmatprep.subr.bf16.mxu0 %v3368_v44 }
 0x124   :  { %3160 = vmatpush3.bf16.msra.mxu0 %v3369_v45 }
 0x125   :  { %3161 = vmatprep.subr.bf16.mxu0 %v3370_v46 }
 0x128   :  { %3162 = vmatpush3.bf16.msra.mxu0 %v3371_v48 }
 0x129   :  { %1123 = vmatprep.subr.bf16.mxu0 %v3389_v47 }
 0x12b   :  { %782 = vmatmul.mubr.bf16.vlgmr.msra.gmra.mxu0 %v3737_v49 }
 0x12c   :  { %789 = vmatprep.mubr.bf16.mxu0 %v3742_v50  ;;  %1124 = vmatpush1.bf16.msra.mxu0 %v3387_v51 }
 0x12d   :  { %1125 = vmatprep.subr.bf16.mxu0 %v3395_v52 }
 0x130   :  { %1126 = vmatpush1.bf16.msra.mxu0 %v3393_v53 }
 0x131   :  { %1127 = vmatprep.subr.bf16.mxu0 %v3401_v54 }
 0x133   :  { %790 = vmatmul.mubr.bf16.gmra.mxu0 %v3761_v55 }
 0x134   :  { %797 = vmatprep.mubr.bf16.mxu0 %v3766_v56  ;;  %1128 = vmatpush1.bf16.msra.mxu0 %v3399_v57 }
 0x135   :  { %1129 = vmatprep.subr.bf16.mxu0 %v3407_v58 }
 0x138   :  { %1130 = vmatpush1.bf16.msra.mxu0 %v3405_v59 }
 0x139   :  { %1131 = vmatprep.subr.bf16.mxu0 %v3413_v0 }
 0x13b   :  { %798 = vmatmul.mubr.bf16.gmra.mxu0 %v3782_v60 }
 0x13c   :  { %805 = vmatprep.mubr.bf16.mxu0 %v3787_v61  ;;  %1132 = vmatpush1.bf16.msra.mxu0 %v3411_v3 }
 0x13d   :  { %1133 = vmatprep.subr.bf16.mxu0 %v3419_v5 }
 0x140   :  { %1134 = vmatpush1.bf16.msra.mxu0 %v3417_v7 }
 0x141   :  { %1135 = vmatprep.subr.bf16.mxu0 %v3425_v9 }
 0x143   :  { %806 = vmatmul.mubr.bf16.gmra.mxu0 %v3794_v62 }
 0x144   :  { %1155 = vmatprep.mubr.bf16.mxu0 %v3528_v1  ;;  %1136 = vmatpush1.bf16.msra.mxu0 %v3423_v11 }
 0x145   :  { %1137 = vmatprep.subr.bf16.mxu0 %v3431_v13 }
 0x148   :  { %1138 = vmatpush1.bf16.msra.mxu0 %v3429_v15 }
 0x1eb   :  { %v3163_v16 = vpop.f32.mrf.mxu0 }
 0x1ed   :  { %v3164_v18 = vpop.f32.mrf.mxu0 }
 0x1ee   :  { %v3165_v19 = vadd.f32 %v3164_v18, %v3163_v16 }
 0x1ef   :  { %v3166_v20 = vpop.f32.mrf.mxu0 }
 0x1f0   :  { %v784_v21 = vadd.f32 %v3165_v19, %v2558_v17 }
 0x1f1   :  { %v3167_v22 = vpop.f32.mrf.mxu0 }
 0x1f2   :  { %v814_v23 = vmax.f32 %v784_v21, 0.0  ;;  %v3168_v24 = vadd.f32 %v3167_v22, %v3166_v20 }
 0x1f3   :  { %v3169_v26 = vpop.f32.mrf.mxu0 }
 0x1f4   :  { %v787_v27 = vadd.f32 %v3168_v24, %v2558_v17  ;;  %v830_v29 = vmul.f32 %v2584_v25, %v814_v23 }
 0x1f5   :  { %v3170_v28 = vpop.f32.mrf.mxu0 }
 0x1f6   :  { %v815_v30 = vmax.f32 %v787_v27, 0.0  ;;  %v3171_v31 = vadd.f32 %v3170_v28, %v3169_v26  ;;  %v846_v38 = vadd.f32 %v2586_v32, %v830_v29  ;;  %v3450_v26 = vld [vmem:[%s4071_s6 + $0xe4] ss:$16 sps:$4 sm:$0xff]   ;;  %v3460_v28 = vld [vmem:[%s4071_s6 + $0xa0] ss:$16 sps:$4 sm:$0xff]  }
 0x1f7   :  { %v3172_v33 = vpop.f32.mrf.mxu0  ;;  %1792 = vmatprep.subr.bf16.mxu0 %v3450_v26  ;;  %v3462_v27 = vld [vmem:[%s4071_s6 + $0xa4] ss:$16 sps:$4 sm:$0xff]  }
 0x1f8   :  { %v831_v34 = vmul.f32 %v2584_v25, %v815_v30  ;;  %v792_v35 = vadd.f32 %v3171_v31, %v2558_v17  ;;  %v3468_v29 = vld [vmem:[%s4071_s6 + $0x84] ss:$16 sps:$4 sm:$0xff]   ;;  %v3466_v30 = vld [vmem:[%s4071_s6 + $0x80] ss:$16 sps:$4 sm:$0xff]  }
 0x1f9   :  { %v3173_v36 = vpop.f32.mrf.mxu0 }
 0x1fa   :  { %v847_v39 = vadd.f32 %v2586_v32, %v831_v34  ;;  %v816_v40 = vmax.f32 %v792_v35, 0.0  ;;  %v3174_v41 = vadd.f32 %v3173_v36, %v3172_v33 }
 0x1fb   :  { %v3175_v42 = vpop.f32.mrf.mxu0 }
 0x1fc   :  { %v854_v43 = vpack.c.bf16 %v847_v39, %v846_v38  ;;  %v795_v44 = vadd.f32 %v3174_v41, %v2558_v17  ;;  %v832_v46 = vmul.f32 %v2584_v25, %v816_v40 }
 0x1fd   :  { %v3176_v45 = vpop.f32.mrf.mxu0 }
 0x1fe   :  { %v817_v47 = vmax.f32 %v795_v44, 0.0  ;;  %v3177_v48 = vadd.f32 %v3176_v45, %v3175_v42  ;;  %1083 = vmatmul.mubr.bf16.vlgmr.msra.gmra.mxu1 %v854_v43  ;;  %1156 = vmatmul.mubr.bf16.vlgmr.msra.gmra.mxu0 %v854_v43  ;;  %v848_v59 = vadd.f32 %v2586_v32, %v832_v46 }
 0x1ff   :  { %v3178_v51 = vpop.f32.mrf.mxu0  ;;  %1092 = vmatprep.mubr.bf16.mxu1 %v3528_v1  ;;  %1165 = vmatprep.mubr.bf16.mxu0 %v3528_v1 }
 0x200   :  { %v833_v52 = vmul.f32 %v2584_v25, %v817_v47  ;;  %v800_v53 = vadd.f32 %v3177_v48, %v2558_v17 }
 0x201   :  { %v3179_v54 = vpop.f32.mrf.mxu0 }
 0x202   :  { %v818_v57 = vmax.f32 %v800_v53, 0.0  ;;  %v3180_v58 = vadd.f32 %v3179_v54, %v3178_v51  ;;  %v849_v63 = vadd.f32 %v2586_v32, %v833_v52 }
 0x203   :  { %v3181_v0 = vpop.f32.mrf.mxu0 }
 0x204   :  { %v803_v2 = vadd.f32 %v3180_v58, %v2558_v17  ;;  %v855_v3 = vpack.c.bf16 %v849_v63, %v848_v59  ;;  %v834_v5 = vmul.f32 %v2584_v25, %v818_v57 }
 0x205   :  { %v3182_v4 = vpop.f32.mrf.mxu0 }
 0x206   :  { %v819_v6 = vmax.f32 %v803_v2, 0.0  ;;  %v3183_v7 = vadd.f32 %v3182_v4, %v3181_v0  ;;  %1093 = vmatmul.mubr.bf16.gmra.mxu1 %v855_v3  ;;  %1166 = vmatmul.mubr.bf16.gmra.mxu0 %v855_v3  ;;  %v850_v14 = vadd.f32 %v2586_v32, %v834_v5 }
 0x207   :  { %v3184_v8 = vpop.f32.mrf.mxu0  ;;  %1102 = vmatprep.mubr.bf16.mxu1 %v3528_v1  ;;  %1175 = vmatprep.mubr.bf16.mxu0 %v3528_v1 }
 0x208   :  { %v835_v9 = vmul.f32 %v2584_v25, %v819_v6  ;;  %v808_v10 = vadd.f32 %v3183_v7, %v2558_v17 }
 0x209   :  { %v3185_v11 = vpop.f32.mrf.mxu0 }
 0x20a   :  { %v820_v12 = vmax.f32 %v808_v10, 0.0  ;;  %v3186_v13 = vadd.f32 %v3185_v11, %v3184_v8  ;;  %v851_v15 = vadd.f32 %v2586_v32, %v835_v9 }
 0x20c   :  { %v811_v16 = vadd.f32 %v3186_v13, %v2558_v17  ;;  %v856_v18 = vpack.c.bf16 %v851_v15, %v850_v14  ;;  %v836_v19 = vmul.f32 %v2584_v25, %v820_v12  ;;  %v3448_v17 = vld [vmem:[%s4071_s6 + $0xe0] ss:$16 sps:$4 sm:$0xff]  }
 0x20d   :  { %1793 = vmatpush1.bf16.msra.mxu0 %v3448_v17 }
 0x20e   :  { %v821_v20 = vmax.f32 %v811_v16, 0.0  ;;  %1103 = vmatmul.mubr.bf16.gmra.mxu1 %v856_v18  ;;  %1176 = vmatmul.mubr.bf16.gmra.mxu0 %v856_v18  ;;  %v852_v22 = vadd.f32 %v2586_v32, %v836_v19 }
 0x20f   :  { %1112 = vmatprep.mubr.bf16.mxu1 %v3528_v1  ;;  %1185 = vmatprep.mubr.bf16.mxu0 %v3528_v1 }
 0x210   :  { %v837_v21 = vmul.f32 %v2584_v25, %v821_v20  ;;  %v3456_v25 = vld [vmem:[%s4071_s6 + $0xc4] ss:$16 sps:$4 sm:$0xff]  }
 0x211   :  { %1794 = vmatprep.subr.bf16.mxu0 %v3456_v25 }
 0x212   :  { %v853_v23 = vadd.f32 %v2586_v32, %v837_v21 }
 0x214   :  { %v857_v24 = vpack.c.bf16 %v853_v23, %v852_v22 }
 0x216   :  { %1113 = vmatmul.mubr.bf16.gmra.mxu1 %v857_v24  ;;  %1186 = vmatmul.mubr.bf16.gmra.mxu0 %v857_v24 }
 0x217   :  { %1523 = vmatprep.mubr.bf16.mxu1 %v3704_v37  ;;  %1824 = vmatprep.mubr.bf16.mxu0 %v3528_v1  ;;  %v3454_v37 = vld [vmem:[%s4071_s6 + $0xc0] ss:$16 sps:$4 sm:$0xff]  }
 0x218   :  { %1795 = vmatpush1.bf16.msra.mxu0 %v3454_v37 }
 0x219   :  { %1796 = vmatprep.subr.bf16.mxu0 %v3462_v27 }
 0x21c   :  { %1797 = vmatpush1.bf16.msra.mxu0 %v3460_v28 }
 0x21d   :  { %1798 = vmatprep.subr.bf16.mxu0 %v3468_v29 }
 0x220   :  { %1799 = vmatpush1.bf16.msra.mxu0 %v3466_v30 }
 0x2be   :  { %v1084_v31 = vpop.f32.mrf.mxu1  ;;  %v1157_v32 = vpop.f32.mrf.mxu0 }
 0x2c0   :  { %v1086_v33 = vpop.f32.mrf.mxu1  ;;  %v1159_v34 = vpop.f32.mrf.mxu0 }
 0x2c2   :  { %v1088_v35 = vpop.f32.mrf.mxu1  ;;  %v1161_v36 = vpop.f32.mrf.mxu0 }
 0x2c3   :  { %v2945_v38 = vpack.c.bf16 %v1088_v35, %v1084_v31  ;;  %v2985_v39 = vpack.c.bf16 %v1161_v36, %v1157_v32 }
 0x2c4   :  { %v1090_v40 = vpop.f32.mrf.mxu1  ;;  %v1163_v41 = vpop.f32.mrf.mxu0 }
 0x2c5   :  { %2946 = vst [vmem:[#allocation2] sm:$0xff] %v2945_v38   ;;  %3124 = vst [vmem:[#allocation2 + $0x40] sm:$0xff] %v2985_v39   ;;  %v2965_v42 = vpack.c.bf16 %v1090_v40, %v1086_v33  ;;  %v3005_v43 = vpack.c.bf16 %v1163_v41, %v1159_v34  ;;  %v3453_v39 = vld [vmem:[%s4071_s6 + $0xec] ss:$16 sps:$4 sm:$0xff]   ;;  %v3451_v41 = vld [vmem:[%s4071_s6 + $0xe8] ss:$16 sps:$4 sm:$0xff]  }
 0x2c6   :  { %v1094_v44 = vpop.f32.mrf.mxu1  ;;  %v1167_v45 = vpop.f32.mrf.mxu0 }
 0x2c7   :  { %3120 = vst [vmem:[#allocation2 + $0x20] sm:$0xff] %v2965_v42   ;;  %3128 = vst [vmem:[#allocation2 + $0x60] sm:$0xff] %v3005_v43   ;;  %v3459_v42 = vld [vmem:[%s4071_s6 + $0xcc] ss:$16 sps:$4 sm:$0xff]   ;;  %v3457_v43 = vld [vmem:[%s4071_s6 + $0xc8] ss:$16 sps:$4 sm:$0xff]  }
 0x2c8   :  { %v1096_v46 = vpop.f32.mrf.mxu1  ;;  %v1169_v47 = vpop.f32.mrf.mxu0 }
 0x2ca   :  { %v1098_v48 = vpop.f32.mrf.mxu1  ;;  %v1171_v51 = vpop.f32.mrf.mxu0 }
 0x2cb   :  { %v2950_v52 = vpack.c.bf16 %v1098_v48, %v1094_v44  ;;  %v2990_v53 = vpack.c.bf16 %v1171_v51, %v1167_v45  ;;  %v3465_v44 = vld [vmem:[%s4071_s6 + $0xac] ss:$16 sps:$4 sm:$0xff]   ;;  %v3463_v45 = vld [vmem:[%s4071_s6 + $0xa8] ss:$16 sps:$4 sm:$0xff]   ;;  %v3486_v51 = vld [vmem:[%s4071_s6 + $0x24] ss:$16 sps:$4 sm:$0xff]  }
 0x2cc   :  { %v1100_v54 = vpop.f32.mrf.mxu1  ;;  %v1173_v57 = vpop.f32.mrf.mxu0  ;;  %v3446_v38 = vld [vmem:[#allocation2 + $0x40] sm:$0xff]   ;;  %v3481_v48 = vld [vmem:[%s4071_s6 + $0x48] ss:$16 sps:$4 sm:$0xff]  }
 0x2cd   :  { %3117 = vst [vmem:[#allocation2 + $0x8] sm:$0xff] %v2950_v52   ;;  %3125 = vst [vmem:[#allocation2 + $0x48] sm:$0xff] %v2990_v53   ;;  %v2970_v58 = vpack.c.bf16 %v1100_v54, %v1096_v46  ;;  %v3010_v59 = vpack.c.bf16 %v1173_v57, %v1169_v47  ;;  %v3447_v40 = vld [vmem:[#allocation2] sm:$0xff]   ;;  %v3489_v52 = vld [vmem:[%s4071_s6 + $0x2c] ss:$16 sps:$4 sm:$0xff]  }
 0x2ce   :  { %v1104_v63 = vpop.f32.mrf.mxu1  ;;  %v1177_v0 = vpop.f32.mrf.mxu0  ;;  %v3438_v29 = vld [vmem:[#allocation2 + $0x60] sm:$0xff]   ;;  %v3487_v54 = vld [vmem:[%s4071_s6 + $0x28] ss:$16 sps:$4 sm:$0xff]  }
 0x2cf   :  { %3121 = vst [vmem:[#allocation2 + $0x28] sm:$0xff] %v2970_v58   ;;  %3129 = vst [vmem:[#allocation2 + $0x68] sm:$0xff] %v3010_v59   ;;  %v3439_v30 = vld [vmem:[#allocation2 + $0x20] sm:$0xff]   ;;  %v3495_v58 = vld [vmem:[%s4071_s6 + $0xc] ss:$16 sps:$4 sm:$0xff]  }
 0x2d0   :  { %v1106_v2 = vpop.f32.mrf.mxu1  ;;  %v1179_v3 = vpop.f32.mrf.mxu0  ;;  %v3472_v46 = vld [vmem:[%s4071_s6 + $0x60] ss:$16 sps:$4 sm:$0xff]   ;;  %v3492_v57 = vld [vmem:[%s4071_s6 + $0x4] ss:$16 sps:$4 sm:$0xff]  }
 0x2d1   :  { %v3478_v47 = vld [vmem:[%s4071_s6 + $0x40] ss:$16 sps:$4 sm:$0xff]  }
 0x2d2   :  { %v1108_v4 = vpop.f32.mrf.mxu1  ;;  %v1181_v5 = vpop.f32.mrf.mxu0  ;;  %v3484_v53 = vld [vmem:[%s4071_s6 + $0x20] ss:$16 sps:$4 sm:$0xff]  }
 0x2d3   :  { %v2955_v6 = vpack.c.bf16 %v1108_v4, %v1104_v63  ;;  %v2995_v7 = vpack.c.bf16 %v1181_v5, %v1177_v0  ;;  %v3490_v59 = vld [vmem:[%s4071_s6] ss:$16 sps:$4 sm:$0xff]   ;;  %v3493_v63 = vld [vmem:[%s4071_s6 + $0x8] ss:$16 sps:$4 sm:$0xff]  }
 0x2d4   :  { %v1110_v8 = vpop.f32.mrf.mxu1  ;;  %v1183_v9 = vpop.f32.mrf.mxu0  ;;  %v3444_v35 = vld [vmem:[#allocation2 + $0x48] sm:$0xff]  }
 0x2d5   :  { %3118 = vst [vmem:[#allocation2 + $0x10] sm:$0xff] %v2955_v6   ;;  %3126 = vst [vmem:[#allocation2 + $0x50] sm:$0xff] %v2995_v7   ;;  %v2975_v10 = vpack.c.bf16 %v1110_v8, %v1106_v2  ;;  %v3015_v11 = vpack.c.bf16 %v1183_v9, %v1179_v3  ;;  %v3445_v36 = vld [vmem:[#allocation2 + $0x8] sm:$0xff]   ;;  %v2651_v2 = vld [vmem:[%s4072_s5] ss:$0 sm:$0xff] }
 0x2d6   :  { %v1114_v12 = vpop.f32.mrf.mxu1  ;;  %v1187_v13 = vpop.f32.mrf.mxu0  ;;  %v3436_v27 = vld [vmem:[#allocation2 + $0x68] sm:$0xff]  }
 0x2d7   :  { %3122 = vst [vmem:[#allocation2 + $0x30] sm:$0xff] %v2975_v10   ;;  %3130 = vst [vmem:[#allocation2 + $0x70] sm:$0xff] %v3015_v11   ;;  %v3437_v28 = vld [vmem:[#allocation2 + $0x28] sm:$0xff]   ;;  %v2669_v10 = vld [vmem:[%s4072_s5 + $0x1] ss:$0 sm:$0xff] }
 0x2d8   :  { %v1116_v14 = vpop.f32.mrf.mxu1  ;;  %v1189_v15 = vpop.f32.mrf.mxu0 }
 0x2da   :  { %v1118_v16 = vpop.f32.mrf.mxu1  ;;  %v1191_v18 = vpop.f32.mrf.mxu0 }
 0x2db   :  { %v2960_v19 = vpack.c.bf16 %v1118_v16, %v1114_v12  ;;  %v3000_v20 = vpack.c.bf16 %v1191_v18, %v1187_v13  ;;  %v2671_v18 = vld [vmem:[%s4072_s5 + $0x2] ss:$0 sm:$0xff] }
 0x2dc   :  { %v1120_v21 = vpop.f32.mrf.mxu1  ;;  %v1193_v22 = vpop.f32.mrf.mxu0  ;;  %v3442_v33 = vld [vmem:[#allocation2 + $0x50] sm:$0xff]  }
 0x2dd   :  { %3119 = vst [vmem:[#allocation2 + $0x18] sm:$0xff] %v2960_v19   ;;  %3127 = vst [vmem:[#allocation2 + $0x58] sm:$0xff] %v3000_v20   ;;  %v2980_v23 = vpack.c.bf16 %v1120_v21, %v1116_v14  ;;  %v3020_v24 = vpack.c.bf16 %v1193_v22, %v1189_v15  ;;  %v3443_v34 = vld [vmem:[#allocation2 + $0x10] sm:$0xff]  }
 0x2de   :  { %v3434_v25 = vld [vmem:[#allocation2 + $0x70] sm:$0xff]  }
 0x2df   :  { %3123 = vst [vmem:[#allocation2 + $0x38] sm:$0xff] %v2980_v23   ;;  %3131 = vst [vmem:[#allocation2 + $0x78] sm:$0xff] %v3020_v24   ;;  %v3435_v37 = vld [vmem:[#allocation2 + $0x30] sm:$0xff]  }
 0x2e4   :  { %v3440_v31 = vld [vmem:[#allocation2 + $0x58] sm:$0xff]  }
 0x2e5   :  { %v3441_v32 = vld [vmem:[#allocation2 + $0x18] sm:$0xff]  }
 0x2e6   :  { %v3432_v17 = vld [vmem:[#allocation2 + $0x78] sm:$0xff]  }
 0x2e7   :  { %v3433_v26 = vld [vmem:[#allocation2 + $0x38] sm:$0xff]   ;;  %3187 = vmatprep.subr.bf16.mxu1 %v3432_v17 }
 0x2e8   :  { %3188 = vmatpush3.bf16.msra.mxu1 %v3433_v26 }
 0x2e9   :  { %3189 = vmatprep.subr.bf16.mxu1 %v3434_v25 }
 0x2ec   :  { %3190 = vmatpush3.bf16.msra.mxu1 %v3435_v37 }
 0x2ed   :  { %3191 = vmatprep.subr.bf16.mxu1 %v3436_v27 }
 0x2f0   :  { %3192 = vmatpush3.bf16.msra.mxu1 %v3437_v28 }
 0x2f1   :  { %3193 = vmatprep.subr.bf16.mxu1 %v3438_v29 }
 0x2f4   :  { %3194 = vmatpush3.bf16.msra.mxu1 %v3439_v30 }
 0x2f5   :  { %3195 = vmatprep.subr.bf16.mxu1 %v3440_v31 }
 0x2f8   :  { %3196 = vmatpush3.bf16.msra.mxu1 %v3441_v32 }
 0x2f9   :  { %3197 = vmatprep.subr.bf16.mxu1 %v3442_v33 }
 0x2fc   :  { %3198 = vmatpush3.bf16.msra.mxu1 %v3443_v34 }
 0x2fd   :  { %3199 = vmatprep.subr.bf16.mxu1 %v3444_v35 }
 0x300   :  { %3200 = vmatpush3.bf16.msra.mxu1 %v3445_v36 }
 0x301   :  { %3201 = vmatprep.subr.bf16.mxu1 %v3446_v38 }
 0x304   :  { %3202 = vmatpush3.bf16.msra.mxu1 %v3447_v40 }
 0x305   :  { %1865 = vmatprep.subr.bf16.mxu1 %v3453_v39 }
 0x307   :  { %1524 = vmatmul.mubr.bf16.vlgmr.msra.gmra.mxu1 %v3737_v49  ;;  %v3471_v49 = vld [vmem:[%s4071_s6 + $0x8c] ss:$16 sps:$4 sm:$0xff]  }
 0x308   :  { %1531 = vmatprep.mubr.bf16.mxu1 %v3742_v50  ;;  %1866 = vmatpush1.bf16.msra.mxu1 %v3451_v41  ;;  %v3469_v50 = vld [vmem:[%s4071_s6 + $0x88] ss:$16 sps:$4 sm:$0xff]  }
 0x309   :  { %1867 = vmatprep.subr.bf16.mxu1 %v3459_v42 }
 0x30c   :  { %1868 = vmatpush1.bf16.msra.mxu1 %v3457_v43 }
 0x30d   :  { %1869 = vmatprep.subr.bf16.mxu1 %v3465_v44 }
 0x30f   :  { %1532 = vmatmul.mubr.bf16.gmra.mxu1 %v3761_v55  ;;  %v3474_v55 = vld [vmem:[%s4071_s6 + $0x64] ss:$16 sps:$4 sm:$0xff]  }
 0x310   :  { %1539 = vmatprep.mubr.bf16.mxu1 %v3766_v56  ;;  %1870 = vmatpush1.bf16.msra.mxu1 %v3463_v45  ;;  %v3477_v56 = vld [vmem:[%s4071_s6 + $0x6c] ss:$16 sps:$4 sm:$0xff]  }
 0x311   :  { %1871 = vmatprep.subr.bf16.mxu1 %v3471_v49  ;;  %1800 = vmatprep.subr.bf16.mxu0 %v3474_v55 }
 0x312   :  { %1801 = vmatpush1.bf16.msra.mxu0 %v3472_v46 }
 0x314   :  { %1872 = vmatpush1.bf16.msra.mxu1 %v3469_v50 }
 0x315   :  { %1873 = vmatprep.subr.bf16.mxu1 %v3477_v56 }
 0x317   :  { %1540 = vmatmul.mubr.bf16.gmra.mxu1 %v3782_v60  ;;  %v3475_v60 = vld [vmem:[%s4071_s6 + $0x68] ss:$16 sps:$4 sm:$0xff]  }
 0x318   :  { %1547 = vmatprep.mubr.bf16.mxu1 %v3787_v61  ;;  %1874 = vmatpush1.bf16.msra.mxu1 %v3475_v60  ;;  %v3480_v61 = vld [vmem:[%s4071_s6 + $0x44] ss:$16 sps:$4 sm:$0xff]  }
 0x319   :  { %1802 = vmatprep.subr.bf16.mxu0 %v3480_v61 }
 0x31a   :  { %1803 = vmatpush1.bf16.msra.mxu0 %v3478_v47 }
 0x31b   :  { %1804 = vmatprep.subr.bf16.mxu0 %v3486_v51 }
 0x31e   :  { %1805 = vmatpush1.bf16.msra.mxu0 %v3484_v53 }
 0x31f   :  { %1548 = vmatmul.mubr.bf16.gmra.mxu1 %v3794_v62  ;;  %v3483_v62 = vld [vmem:[%s4071_s6 + $0x4c] ss:$16 sps:$4 sm:$0xff]   ;;  %1806 = vmatprep.subr.bf16.mxu0 %v3492_v57 }
 0x320   :  { %1897 = vmatprep.mubr.bf16.mxu1 %v3528_v1  ;;  %1875 = vmatprep.subr.bf16.mxu1 %v3483_v62 }
 0x321   :  { %1876 = vmatpush1.bf16.msra.mxu1 %v3481_v48 }
 0x322   :  { %1877 = vmatprep.subr.bf16.mxu1 %v3489_v52  ;;  %1807 = vmatpush1.bf16.msra.mxu0 %v3490_v59 }
 0x325   :  { %1878 = vmatpush1.bf16.msra.mxu1 %v3487_v54 }
 0x326   :  { %1879 = vmatprep.subr.bf16.mxu1 %v3495_v58 }
 0x329   :  { %1880 = vmatpush1.bf16.msra.mxu1 %v3493_v63 }
 0x3c7   :  { %v3203_v0 = vpop.f32.mrf.mxu1 }
 0x3c9   :  { %v3204_v3 = vpop.f32.mrf.mxu1 }
 0x3ca   :  { %v3205_v4 = vadd.f32 %v3204_v3, %v3203_v0  ;;  %v3520_v0 = vld [vmem:[%s4068_s0 + $0x4] ss:$8 sps:$4 sm:$0xff]   ;;  %v3513_v3 = vld [vmem:[%s4073_s8 + $0x30] sm:$0xff]  }
 0x3cb   :  { %v3206_v5 = vpop.f32.mrf.mxu1 }
 0x3cc   :  { %v1526_v6 = vadd.f32 %v3205_v4, %v2651_v2 }
 0x3cd   :  { %v3207_v7 = vpop.f32.mrf.mxu1 }
 0x3ce   :  { %v1556_v8 = vmax.f32 %v1526_v6, 0.0  ;;  %v3208_v9 = vadd.f32 %v3207_v7, %v3206_v5 }
 0x3cf   :  { %v3209_v11 = vpop.f32.mrf.mxu1 }
 0x3d0   :  { %v1529_v12 = vadd.f32 %v3208_v9, %v2651_v2  ;;  %v1572_v14 = vmul.f32 %v2669_v10, %v1556_v8 }
 0x3d1   :  { %v3210_v13 = vpop.f32.mrf.mxu1 }
 0x3d2   :  { %v1557_v15 = vmax.f32 %v1529_v12, 0.0  ;;  %v3211_v16 = vadd.f32 %v3210_v13, %v3209_v11  ;;  %v1588_v23 = vadd.f32 %v2671_v18, %v1572_v14 }
 0x3d3   :  { %v3212_v19 = vpop.f32.mrf.mxu1 }
 0x3d4   :  { %v1573_v20 = vmul.f32 %v2669_v10, %v1557_v15  ;;  %v1534_v21 = vadd.f32 %v3211_v16, %v2651_v2 }
 0x3d5   :  { %v3213_v22 = vpop.f32.mrf.mxu1 }
 0x3d6   :  { %v1589_v24 = vadd.f32 %v2671_v18, %v1573_v20  ;;  %v1558_v17 = vmax.f32 %v1534_v21, 0.0  ;;  %v3214_v26 = vadd.f32 %v3213_v22, %v3212_v19 }
 0x3d7   :  { %v3215_v25 = vpop.f32.mrf.mxu1 }
 0x3d8   :  { %v1596_v37 = vpack.c.bf16 %v1589_v24, %v1588_v23  ;;  %v1537_v27 = vadd.f32 %v3214_v26, %v2651_v2  ;;  %v1574_v29 = vmul.f32 %v2669_v10, %v1558_v17 }
 0x3d9   :  { %v3216_v28 = vpop.f32.mrf.mxu1 }
 0x3da   :  { %v1559_v30 = vmax.f32 %v1537_v27, 0.0  ;;  %v3217_v31 = vadd.f32 %v3216_v28, %v3215_v25  ;;  %1825 = vmatmul.mubr.bf16.vlgmr.msra.gmra.mxu0 %v1596_v37  ;;  %1898 = vmatmul.mubr.bf16.vlgmr.msra.gmra.mxu1 %v1596_v37  ;;  %v1590_v39 = vadd.f32 %v2671_v18, %v1574_v29 }
 0x3db   :  { %v3218_v32 = vpop.f32.mrf.mxu1  ;;  %1834 = vmatprep.mubr.bf16.mxu0 %v3528_v1  ;;  %1907 = vmatprep.mubr.bf16.mxu1 %v3528_v1 }
 0x3dc   :  { %v1575_v33 = vmul.f32 %v2669_v10, %v1559_v30  ;;  %v1542_v34 = vadd.f32 %v3217_v31, %v2651_v2 }
 0x3dd   :  { %v3219_v35 = vpop.f32.mrf.mxu1 }
 0x3de   :  { %v1560_v36 = vmax.f32 %v1542_v34, 0.0  ;;  %v3220_v38 = vadd.f32 %v3219_v35, %v3218_v32  ;;  %v1591_v40 = vadd.f32 %v2671_v18, %v1575_v33 }
 0x3df   :  { %v3221_v41 = vpop.f32.mrf.mxu1 }
 0x3e0   :  { %v1545_v42 = vadd.f32 %v3220_v38, %v2651_v2  ;;  %v1597_v43 = vpack.c.bf16 %v1591_v40, %v1590_v39  ;;  %v1576_v45 = vmul.f32 %v2669_v10, %v1560_v36 }
 0x3e1   :  { %v3222_v44 = vpop.f32.mrf.mxu1 }
 0x3e2   :  { %v1561_v49 = vmax.f32 %v1545_v42, 0.0  ;;  %v3223_v50 = vadd.f32 %v3222_v44, %v3221_v41  ;;  %1835 = vmatmul.mubr.bf16.gmra.mxu0 %v1597_v43  ;;  %1908 = vmatmul.mubr.bf16.gmra.mxu1 %v1597_v43  ;;  %v1592_v47 = vadd.f32 %v2671_v18, %v1576_v45 }
 0x3e3   :  { %v3224_v55 = vpop.f32.mrf.mxu1  ;;  %1844 = vmatprep.mubr.bf16.mxu0 %v3528_v1  ;;  %1917 = vmatprep.mubr.bf16.mxu1 %v3528_v1 }
 0x3e4   :  { %v1577_v56 = vmul.f32 %v2669_v10, %v1561_v49  ;;  %v1550_v46 = vadd.f32 %v3223_v50, %v2651_v2 }
 0x3e5   :  { %v3225_v60 = vpop.f32.mrf.mxu1 }
 0x3e6   :  { %v1562_v61 = vmax.f32 %v1550_v46, 0.0  ;;  %v3226_v62 = vadd.f32 %v3225_v60, %v3224_v55  ;;  %v1593_v48 = vadd.f32 %v2671_v18, %v1577_v56 }
 0x3e8   :  { %v1553_v51 = vadd.f32 %v3226_v62, %v2651_v2  ;;  %v1598_v52 = vpack.c.bf16 %v1593_v48, %v1592_v47  ;;  %v1578_v53 = vmul.f32 %v2669_v10, %v1562_v61  ;;  %v3512_v2 = vld [vmem:[%s4073_s8 + $0x38] sm:$0xff]  }
 0x3e9   :  { %3279 = vmatprep.subr.bf16.mxu1 %v3512_v2 }
 0x3ea   :  { %v1563_v54 = vmax.f32 %v1553_v51, 0.0  ;;  %1845 = vmatmul.mubr.bf16.gmra.mxu0 %v1598_v52  ;;  %1918 = vmatmul.mubr.bf16.gmra.mxu1 %v1598_v52  ;;  %v1594_v58 = vadd.f32 %v2671_v18, %v1578_v53 }
 0x3eb   :  { %1854 = vmatprep.mubr.bf16.mxu0 %v3528_v1  ;;  %1927 = vmatprep.mubr.bf16.mxu1 %v3528_v1 }
 0x3ec   :  { %v1579_v57 = vmul.f32 %v2669_v10, %v1563_v54  ;;  %3280 = vmatpush3.bf16.msra.mxu1 %v3512_v2 }
 0x3ed   :  { %3281 = vmatprep.subr.bf16.mxu1 %v3513_v3 }
 0x3ee   :  { %v1595_v59 = vadd.f32 %v2671_v18, %v1579_v57 }
 0x3f0   :  { %v1599_v63 = vpack.c.bf16 %v1595_v59, %v1594_v58  ;;  %3282 = vmatpush3.bf16.msra.mxu1 %v3513_v3 }
 0x3f2   :  { %1855 = vmatmul.mubr.bf16.gmra.mxu0 %v1599_v63  ;;  %1928 = vmatmul.mubr.bf16.gmra.mxu1 %v1599_v63 }
 0x3f3   :  { %2265 = vmatprep.mubr.bf16.mxu0 %v3520_v0 }
 0x49a   :  { %v1826_v1 = vpop.f32.mrf.mxu0  ;;  %v1899_v4 = vpop.f32.mrf.mxu1 }
 0x49c   :  { %v1828_v5 = vpop.f32.mrf.mxu0  ;;  %v1901_v6 = vpop.f32.mrf.mxu1 }
 0x49e   :  { %v1830_v7 = vpop.f32.mrf.mxu0  ;;  %v1903_v8 = vpop.f32.mrf.mxu1 }
 0x49f   :  { %v3025_v9 = vpack.c.bf16 %v1830_v7, %v1826_v1  ;;  %v3065_v10 = vpack.c.bf16 %v1903_v8, %v1899_v4  ;;  %v3521_v1 = vld [vmem:[%s4068_s0] ss:$8 sps:$4 sm:$0xff]   ;;  %v3522_v4 = vld [vmem:[%s4068_s0 + $0x14] ss:$8 sps:$4 sm:$0xff]  }
 0x4a0   :  { %v1832_v11 = vpop.f32.mrf.mxu0  ;;  %v1905_v12 = vpop.f32.mrf.mxu1  ;;  %v3525_v7 = vld [vmem:[%s4068_s0 + $0x20] ss:$8 sps:$4 sm:$0xff]   ;;  %v3526_v8 = vld [vmem:[%s4068_s0 + $0x34] ss:$8 sps:$4 sm:$0xff]  }
 0x4a1   :  { %3026 = vst [vmem:[#allocation2] sm:$0xff] %v3025_v9   ;;  %3139 = vst [vmem:[#allocation2 + $0x40] sm:$0xff] %v3065_v10   ;;  %v3045_v13 = vpack.c.bf16 %v1832_v11, %v1828_v5  ;;  %v3085_v14 = vpack.c.bf16 %v1905_v12, %v1901_v6  ;;  %v3523_v5 = vld [vmem:[%s4068_s0 + $0x10] ss:$8 sps:$4 sm:$0xff]   ;;  %v3524_v6 = vld [vmem:[%s4068_s0 + $0x24] ss:$8 sps:$4 sm:$0xff]  }
 0x4a2   :  { %v1836_v15 = vpop.f32.mrf.mxu0  ;;  %v1909_v16 = vpop.f32.mrf.mxu1  ;;  %v3527_v9 = vld [vmem:[%s4068_s0 + $0x30] ss:$8 sps:$4 sm:$0xff]   ;;  %v3514_v10 = vld [vmem:[%s4073_s8 + $0x28] sm:$0xff]   ;;  %v3515_v11 = vld [vmem:[%s4073_s8 + $0x20] sm:$0xff]  }
 0x4a3   :  { %3135 = vst [vmem:[#allocation2 + $0x20] sm:$0xff] %v3045_v13   ;;  %3143 = vst [vmem:[#allocation2 + $0x60] sm:$0xff] %v3085_v14   ;;  %3283 = vmatprep.subr.bf16.mxu1 %v3514_v10  ;;  %v3516_v12 = vld [vmem:[%s4073_s8 + $0x18] sm:$0xff]   ;;  %v3517_v13 = vld [vmem:[%s4073_s8 + $0x10] sm:$0xff]  }
 0x4a4   :  { %v1838_v18 = vpop.f32.mrf.mxu0  ;;  %v1911_v19 = vpop.f32.mrf.mxu1  ;;  %3284 = vmatpush3.bf16.msra.mxu1 %v3514_v10  ;;  %v3518_v14 = vld [vmem:[%s4073_s8 + $0x8] sm:$0xff]  }
 0x4a5   :  { %3285 = vmatprep.subr.bf16.mxu1 %v3515_v11 }
 0x4a6   :  { %v1840_v20 = vpop.f32.mrf.mxu0  ;;  %v1913_v21 = vpop.f32.mrf.mxu1 }
 0x4a7   :  { %v3030_v22 = vpack.c.bf16 %v1840_v20, %v1836_v15  ;;  %v3070_v23 = vpack.c.bf16 %v1913_v21, %v1909_v16  ;;  %v3519_v15 = vld [vmem:[%s4073_s8] sm:$0xff]  }
 0x4a8   :  { %v1842_v24 = vpop.f32.mrf.mxu0  ;;  %v1915_v17 = vpop.f32.mrf.mxu1  ;;  %v3510_v2 = vld [vmem:[#allocation2 + $0x40] sm:$0xff]   ;;  %3286 = vmatpush3.bf16.msra.mxu1 %v3515_v11 }
 0x4a9   :  { %3132 = vst [vmem:[#allocation2 + $0x8] sm:$0xff] %v3030_v22   ;;  %3140 = vst [vmem:[#allocation2 + $0x48] sm:$0xff] %v3070_v23   ;;  %v3050_v26 = vpack.c.bf16 %v1842_v24, %v1838_v18  ;;  %v3090_v25 = vpack.c.bf16 %v1915_v17, %v1911_v19  ;;  %v3511_v3 = vld [vmem:[#allocation2] sm:$0xff]   ;;  %3287 = vmatprep.subr.bf16.mxu1 %v3516_v12 }
 0x4aa   :  { %v1846_v37 = vpop.f32.mrf.mxu0  ;;  %v1919_v27 = vpop.f32.mrf.mxu1  ;;  %v3502_v52 = vld [vmem:[#allocation2 + $0x60] sm:$0xff]  }
 0x4ab   :  { %3136 = vst [vmem:[#allocation2 + $0x28] sm:$0xff] %v3050_v26   ;;  %3144 = vst [vmem:[#allocation2 + $0x68] sm:$0xff] %v3090_v25   ;;  %v3503_v53 = vld [vmem:[#allocation2 + $0x20] sm:$0xff]  }
 0x4ac   :  { %v1848_v28 = vpop.f32.mrf.mxu0  ;;  %v1921_v29 = vpop.f32.mrf.mxu1  ;;  %3288 = vmatpush3.bf16.msra.mxu1 %v3516_v12  ;;  %v2736_v18 = vld [vmem:[%s4074_s7] ss:$0 sm:$0xff]  ;;  %v2754_v26 = vld [vmem:[%s4074_s7 + $0x1] ss:$0 sm:$0xff] }
 0x4ad   :  { %3289 = vmatprep.subr.bf16.mxu1 %v3517_v13 }
 0x4ae   :  { %v1850_v30 = vpop.f32.mrf.mxu0  ;;  %v1923_v31 = vpop.f32.mrf.mxu1 }
 0x4af   :  { %v3035_v32 = vpack.c.bf16 %v1850_v30, %v1846_v37  ;;  %v3075_v33 = vpack.c.bf16 %v1923_v31, %v1919_v27  ;;  %v2756_v31 = vld [vmem:[%s4074_s7 + $0x2] ss:$0 sm:$0xff] }
 0x4b0   :  { %v1852_v34 = vpop.f32.mrf.mxu0  ;;  %v1925_v35 = vpop.f32.mrf.mxu1  ;;  %v3508_v63 = vld [vmem:[#allocation2 + $0x48] sm:$0xff]   ;;  %3290 = vmatpush3.bf16.msra.mxu1 %v3517_v13 }
 0x4b1   :  { %3133 = vst [vmem:[#allocation2 + $0x10] sm:$0xff] %v3035_v32   ;;  %3141 = vst [vmem:[#allocation2 + $0x50] sm:$0xff] %v3075_v33   ;;  %v3055_v36 = vpack.c.bf16 %v1852_v34, %v1848_v28  ;;  %v3095_v38 = vpack.c.bf16 %v1925_v35, %v1921_v29  ;;  %v3509_v0 = vld [vmem:[#allocation2 + $0x8] sm:$0xff]   ;;  %3291 = vmatprep.subr.bf16.mxu1 %v3518_v14 }
 0x4b2   :  { %v1856_v39 = vpop.f32.mrf.mxu0  ;;  %v1929_v40 = vpop.f32.mrf.mxu1  ;;  %v3500_v48 = vld [vmem:[#allocation2 + $0x68] sm:$0xff]  }
 0x4b3   :  { %3137 = vst [vmem:[#allocation2 + $0x30] sm:$0xff] %v3055_v36   ;;  %3145 = vst [vmem:[#allocation2 + $0x70] sm:$0xff] %v3095_v38   ;;  %v3501_v51 = vld [vmem:[#allocation2 + $0x28] sm:$0xff]  }
 0x4b4   :  { %v1858_v41 = vpop.f32.mrf.mxu0  ;;  %v1931_v42 = vpop.f32.mrf.mxu1  ;;  %3292 = vmatpush3.bf16.msra.mxu1 %v3518_v14 }
 0x4b5   :  { %3293 = vmatprep.subr.bf16.mxu1 %v3519_v15 }
 0x4b6   :  { %v1860_v43 = vpop.f32.mrf.mxu0  ;;  %v1933_v44 = vpop.f32.mrf.mxu1 }
 0x4b7   :  { %v3040_v45 = vpack.c.bf16 %v1860_v43, %v1856_v39  ;;  %v3080_v49 = vpack.c.bf16 %v1933_v44, %v1929_v40 }
 0x4b8   :  { %v1862_v50 = vpop.f32.mrf.mxu0  ;;  %v1935_v55 = vpop.f32.mrf.mxu1  ;;  %v3506_v58 = vld [vmem:[#allocation2 + $0x50] sm:$0xff]   ;;  %3294 = vmatpush3.bf16.msra.mxu1 %v3519_v15  ;;  %v2757_v15 = vld [vmem:[%s4075_s9] ss:$0 sm:$0xff] }
 0x4b9   :  { %3134 = vst [vmem:[#allocation2 + $0x18] sm:$0xff] %v3040_v45   ;;  %3142 = vst [vmem:[#allocation2 + $0x58] sm:$0xff] %v3080_v49   ;;  %v3060_v56 = vpack.c.bf16 %v1862_v50, %v1858_v41  ;;  %v3100_v46 = vpack.c.bf16 %v1935_v55, %v1931_v42  ;;  %v3507_v59 = vld [vmem:[#allocation2 + $0x10] sm:$0xff]  }
 0x4ba   :  { %v3498_v62 = vld [vmem:[#allocation2 + $0x70] sm:$0xff]  }
 0x4bb   :  { %3138 = vst [vmem:[#allocation2 + $0x38] sm:$0xff] %v3060_v56   ;;  %3146 = vst [vmem:[#allocation2 + $0x78] sm:$0xff] %v3100_v46   ;;  %v3499_v47 = vld [vmem:[#allocation2 + $0x30] sm:$0xff]  }
 0x4c0   :  { %v3504_v54 = vld [vmem:[#allocation2 + $0x58] sm:$0xff]  }
 0x4c1   :  { %v3505_v57 = vld [vmem:[#allocation2 + $0x18] sm:$0xff]  }
 0x4c2   :  { %v3496_v60 = vld [vmem:[#allocation2 + $0x78] sm:$0xff]  }
 0x4c3   :  { %v3497_v61 = vld [vmem:[#allocation2 + $0x38] sm:$0xff]   ;;  %3227 = vmatprep.subr.bf16.mxu0 %v3496_v60 }
 0x4c4   :  { %3228 = vmatpush3.bf16.msra.mxu0 %v3497_v61 }
 0x4c5   :  { %3229 = vmatprep.subr.bf16.mxu0 %v3498_v62 }
 0x4c8   :  { %3230 = vmatpush3.bf16.msra.mxu0 %v3499_v47 }
 0x4c9   :  { %3231 = vmatprep.subr.bf16.mxu0 %v3500_v48 }
 0x4cc   :  { %3232 = vmatpush3.bf16.msra.mxu0 %v3501_v51 }
 0x4cd   :  { %3233 = vmatprep.subr.bf16.mxu0 %v3502_v52 }
 0x4d0   :  { %3234 = vmatpush3.bf16.msra.mxu0 %v3503_v53 }
 0x4d1   :  { %3235 = vmatprep.subr.bf16.mxu0 %v3504_v54 }
 0x4d4   :  { %3236 = vmatpush3.bf16.msra.mxu0 %v3505_v57 }
 0x4d5   :  { %3237 = vmatprep.subr.bf16.mxu0 %v3506_v58 }
 0x4d8   :  { %3238 = vmatpush3.bf16.msra.mxu0 %v3507_v59 }
 0x4d9   :  { %3239 = vmatprep.subr.bf16.mxu0 %v3508_v63 }
 0x4dc   :  { %3240 = vmatpush3.bf16.msra.mxu0 %v3509_v0 }
 0x4dd   :  { %3241 = vmatprep.subr.bf16.mxu0 %v3510_v2 }
 0x4e0   :  { %3242 = vmatpush3.bf16.msra.mxu0 %v3511_v3 }
 0x4e3   :  { %2266 = vmatmul.mubr.bf16.vlgmr.msra.gmra.mxu0 %v3521_v1 }
 0x4e4   :  { %2273 = vmatprep.mubr.bf16.mxu0 %v3522_v4 }
 0x4eb   :  { %2274 = vmatmul.mubr.bf16.gmra.mxu0 %v3523_v5 }
 0x4ec   :  { %2281 = vmatprep.mubr.bf16.mxu0 %v3524_v6 }
 0x4f3   :  { %2282 = vmatmul.mubr.bf16.gmra.mxu0 %v3525_v7 }
 0x4f4   :  { %2289 = vmatprep.mubr.bf16.mxu0 %v3526_v8 }
 0x4fb   :  { %2290 = vmatmul.mubr.bf16.gmra.mxu0 %v3527_v9 }
 0x5a3   :  { %v3243_v16 = vpop.f32.mrf.mxu0 }
 0x5a5   :  { %v3244_v19 = vpop.f32.mrf.mxu0 }
 0x5a6   :  { %v3245_v20 = vadd.f32 %v3244_v19, %v3243_v16 }
 0x5a7   :  { %v3246_v21 = vpop.f32.mrf.mxu0 }
 0x5a8   :  { %v2268_v22 = vadd.f32 %v3245_v20, %v2736_v18 }
 0x5a9   :  { %v3247_v23 = vpop.f32.mrf.mxu0 }
 0x5aa   :  { %v2298_v24 = vmax.f32 %v2268_v22, 0.0  ;;  %v3248_v17 = vadd.f32 %v3247_v23, %v3246_v21 }
 0x5ab   :  { %v3249_v25 = vpop.f32.mrf.mxu0 }
 0x5ac   :  { %v2271_v37 = vadd.f32 %v3248_v17, %v2736_v18  ;;  %v2314_v28 = vmul.f32 %v2754_v26, %v2298_v24 }
 0x5ad   :  { %v3250_v27 = vpop.f32.mrf.mxu0 }
 0x5ae   :  { %v2299_v29 = vmax.f32 %v2271_v37, 0.0  ;;  %v3251_v30 = vadd.f32 %v3250_v27, %v3249_v25  ;;  %v2330_v39 = vadd.f32 %v2756_v31, %v2314_v28 }
 0x5af   :  { %v3252_v32 = vpop.f32.mrf.mxu0 }
 0x5b0   :  { %v2315_v33 = vmul.f32 %v2754_v26, %v2299_v29  ;;  %v2276_v34 = vadd.f32 %v3251_v30, %v2736_v18 }
 0x5b1   :  { %v3253_v35 = vpop.f32.mrf.mxu0 }
 0x5b2   :  { %v2300_v36 = vmax.f32 %v2276_v34, 0.0  ;;  %v3254_v38 = vadd.f32 %v3253_v35, %v3252_v32  ;;  %v2331_v40 = vadd.f32 %v2756_v31, %v2315_v33 }
 0x5b3   :  { %v3255_v41 = vpop.f32.mrf.mxu0 }
 0x5b4   :  { %v2279_v42 = vadd.f32 %v3254_v38, %v2736_v18  ;;  %v2338_v43 = vpack.c.bf16 %v2331_v40, %v2330_v39  ;;  %v2316_v45 = vmul.f32 %v2754_v26, %v2300_v36 }
 0x5b5   :  { %v3256_v44 = vpop.f32.mrf.mxu0 }
 0x5b6   :  { %v2301_v49 = vmax.f32 %v2279_v42, 0.0  ;;  %v3257_v50 = vadd.f32 %v3256_v44, %v3255_v41  ;;  %3295 = vmatprep.mubr.bf16.mxu1 %v2338_v43  ;;  %v2332_v61 = vadd.f32 %v2756_v31, %v2316_v45 }
 0x5b7   :  { %v3258_v55 = vpop.f32.mrf.mxu0 }
 0x5b8   :  { %v2317_v56 = vmul.f32 %v2754_v26, %v2301_v49  ;;  %v2284_v46 = vadd.f32 %v3257_v50, %v2736_v18 }
 0x5b9   :  { %v3259_v60 = vpop.f32.mrf.mxu0 }
 0x5ba   :  { %v2333_v62 = vadd.f32 %v2756_v31, %v2317_v56  ;;  %v2302_v47 = vmax.f32 %v2284_v46, 0.0  ;;  %v3260_v48 = vadd.f32 %v3259_v60, %v3258_v55 }
 0x5bb   :  { %v3261_v51 = vpop.f32.mrf.mxu0 }
 0x5bc   :  { %v2339_v52 = vpack.c.bf16 %v2333_v62, %v2332_v61  ;;  %v2287_v53 = vadd.f32 %v3260_v48, %v2736_v18  ;;  %v2318_v57 = vmul.f32 %v2754_v26, %v2302_v47 }
 0x5bd   :  { %v3262_v54 = vpop.f32.mrf.mxu0 }
 0x5be   :  { %v2303_v58 = vmax.f32 %v2287_v53, 0.0  ;;  %v3263_v59 = vadd.f32 %v3262_v54, %v3261_v51  ;;  %3296 = vmatmul.mubr.bf16.vlgmr.msra.gmra.mxu1 %v2339_v52  ;;  %v2334_v5 = vadd.f32 %v2756_v31, %v2318_v57 }
 0x5bf   :  { %v3264_v63 = vpop.f32.mrf.mxu0 }
 0x5c0   :  { %v2319_v0 = vmul.f32 %v2754_v26, %v2303_v58  ;;  %v2292_v2 = vadd.f32 %v3263_v59, %v2736_v18 }
 0x5c1   :  { %v3265_v3 = vpop.f32.mrf.mxu0 }
 0x5c2   :  { %v2304_v1 = vmax.f32 %v2292_v2, 0.0  ;;  %v3266_v4 = vadd.f32 %v3265_v3, %v3264_v63  ;;  %v2335_v6 = vadd.f32 %v2756_v31, %v2319_v0 }
 0x5c4   :  { %v2295_v7 = vadd.f32 %v3266_v4, %v2736_v18  ;;  %v2340_v8 = vpack.c.bf16 %v2335_v6, %v2334_v5  ;;  %v2320_v9 = vmul.f32 %v2754_v26, %v2304_v1 }
 0x5c6   :  { %v2305_v10 = vmax.f32 %v2295_v7, 0.0  ;;  %3299 = vmatprep.mubr.bf16.mxu1 %v2340_v8  ;;  %v2336_v12 = vadd.f32 %v2756_v31, %v2320_v9 }
 0x5c8   :  { %v2321_v11 = vmul.f32 %v2754_v26, %v2305_v10 }
 0x5ca   :  { %v2337_v13 = vadd.f32 %v2756_v31, %v2321_v11 }
 0x5cc   :  { %v2341_v14 = vpack.c.bf16 %v2337_v13, %v2336_v12 }
 0x5ce   :  { %3300 = vmatmul.mubr.bf16.gmra.mxu1 %v2341_v14 }
 0x67e   :  { %v3297_v16 = vpop.f32.mrf.mxu1 }
 0x67f   :  { %v2456_v19 = vadd.f32 %v3297_v16, %v2757_v15 }
 0x680   :  { %v2447_v20 = vpop.f32.mrf.mxu1 }
 0x681   :  { %2480 = vst [vmem:[%s4076_s10 + $0x10] sm:$0xff] %v2456_v19  ;;  %v2448_v18 = vadd.f32 %v2757_v15, %v2447_v20 }
 0x682   :  { %v3298_v21 = vpop.f32.mrf.mxu1 }
 0x683   :  { %2478 = vst [vmem:[%s4076_s10] sm:$0xff] %v2448_v18  ;;  %v2459_v22 = vadd.f32 %v3298_v21, %v2757_v15 }
 0x684   :  { %v2450_v23 = vpop.f32.mrf.mxu1 }
 0x685   :  { %2481 = vst [vmem:[%s4076_s10 + $0x18] sm:$0xff] %v2459_v22  ;;  %v2451_v24 = vadd.f32 %v2757_v15, %v2450_v23 }
 0x687   :  { %2479 = vst [vmem:[%s4076_s10 + $0x8] sm:$0xff] %v2451_v24 }
 0x68e   :  { %v3301_v17 = vpop.f32.mrf.mxu1 }
 0x68f   :  { %v2472_v26 = vadd.f32 %v3301_v17, %v2757_v15 }
 0x690   :  { %v2463_v25 = vpop.f32.mrf.mxu1 }
 0x691   :  { %2484 = vst [vmem:[%s4076_s10 + $0x30] sm:$0xff] %v2472_v26  ;;  %v2464_v37 = vadd.f32 %v2757_v15, %v2463_v25 }
 0x692   :  { %v3302_v27 = vpop.f32.mrf.mxu1 }
 0x693   :  { %2482 = vst [vmem:[%s4076_s10 + $0x20] sm:$0xff] %v2464_v37  ;;  %v2475_v28 = vadd.f32 %v3302_v27, %v2757_v15 }
 0x694   :  { %v2466_v29 = vpop.f32.mrf.mxu1 }
 0x695   :  { %2485 = vst [vmem:[%s4076_s10 + $0x38] sm:$0xff] %v2475_v28  ;;  %v2467_v30 = vadd.f32 %v2757_v15, %v2466_v29 }
 0x697   :  { %2483 = vst [vmem:[%s4076_s10 + $0x28] sm:$0xff] %v2467_v30 }

</bundles_post_ra>
